<compile_context>
chip_gen: v7x
topology: tpu7x:2x2x1
jax: 0.10.0
libtpu: 0.0.40
codegen_flags: <defaults>
</compile_context>

<pallas_src>
import math

import numpy as np

import jax
import jax.numpy as jnp
from jax import lax
from jax.experimental import pallas as pl
from jax.experimental.pallas import tpu as pltpu

# ------------------------------------------------------------------
# Hyper-parameters implied by TranAD.__init__
# ------------------------------------------------------------------
FEATS = 4                       # n_feats
N_WINDOW = 10                   # n_window -> src sequence length
D_MODEL = 2 * FEATS             # transformer width
N_HEAD = FEATS                  # nhead
HEAD_DIM = D_MODEL // N_HEAD    # = 2
DIM_FF = 16                     # dim_feedforward
BATCH = 2

SLAB_W = 128                    # lane-padded packed-parameter slab width
NEG_INF = -1e9                  # additive mask value


# ------------------------------------------------------------------
# Matmul helpers: bf16 MXU inputs, f32 accumulation
# ------------------------------------------------------------------
def _mm(a, b):
    # a (M, K) @ b (K, N) -> (M, N), bf16 inputs, f32 accumulate
    return lax.dot_general(a.astype(jnp.bfloat16), b.astype(jnp.bfloat16),
                           (((1,), (0,)), ((), ())),
                           preferred_element_type=jnp.float32)


def _mm_t(a, b):
    # a (M, K) @ b (N, K)^T -> (M, N), bf16 inputs, f32 accumulate
    return lax.dot_general(a.astype(jnp.bfloat16), b.astype(jnp.bfloat16),
                           (((1,), (1,)), ((), ())),
                           preferred_element_type=jnp.float32)


def _mm_f32(a, b):
    # exact f32 matmul (used only for the tiny 0/1 batch-broadcast)
    return lax.dot_general(a, b, (((1,), (0,)), ((), ())),
                           preferred_element_type=jnp.float32)


def positional_encoding_np(length, d_model):
    # TranAD-style PE: pe[p, i] = sin(p * w_i) + cos(p * w_i), w_i = 10000^(-i/d)
    pos = np.arange(length, dtype=np.float32)[:, None]
    div = np.exp(np.arange(d_model, dtype=np.float32)
                 * (-math.log(10000.0) / d_model))
    return (np.sin(pos * div) + np.cos(pos * div)).astype(np.float32)


# ------------------------------------------------------------------
# Raw parameters (PyTorch layout; deterministic synthetic init)
# ------------------------------------------------------------------
def _mha_shapes(prefix):
    return [(f"{prefix}_in_w", (3 * D_MODEL, D_MODEL)),
            (f"{prefix}_in_b", (1, 3 * D_MODEL)),
            (f"{prefix}_out_w", (D_MODEL, D_MODEL)),
            (f"{prefix}_out_b", (1, D_MODEL))]


def _ffn_shapes(prefix):
    return [(f"{prefix}_l1_w", (DIM_FF, D_MODEL)), (f"{prefix}_l1_b", (1, DIM_FF)),
            (f"{prefix}_l2_w", (D_MODEL, DIM_FF)), (f"{prefix}_l2_b", (1, D_MODEL))]


PARAM_SHAPES = (
    _mha_shapes("e") + _ffn_shapes("e")
    + _mha_shapes("d1_sa") + _mha_shapes("d1_ca") + _ffn_shapes("d1")
    + _mha_shapes("d2_sa") + _mha_shapes("d2_ca") + _ffn_shapes("d2")
    + [("fcn_w", (FEATS, D_MODEL)), ("fcn_b", (1, FEATS))]
)


def init_params(key):
    params = []
    for _name, shape in PARAM_SHAPES:
        key, sub = jax.random.split(key)
        bound = 1.0 / math.sqrt(shape[-1])
        params.append(jax.random.uniform(sub, shape, jnp.float32, -bound, bound))
    return params


# ------------------------------------------------------------------
# Host-side (one-time) parameter fusion + slab packing — pure numpy
# ------------------------------------------------------------------
def _pack_slab(entries):
    """Pack 2-D f32 arrays row-wise into one (rows, 128) slab; 8-sublane aligned."""
    layout, off = {}, 0
    for name, a in entries:
        assert a.ndim == 2 and a.shape[1] <= SLAB_W
        layout[name] = (off, tuple(a.shape))
        off += ((a.shape[0] + 7) // 8) * 8
    slab = np.zeros((off, SLAB_W), np.float32)
    for name, a in entries:
        o = layout[name][0]
        slab[o:o + a.shape[0], 0:a.shape[1]] = a
    return jnp.asarray(slab), layout


def _derive_slab_entries(params, batch):
    B, W, F = batch, N_WINDOW, FEATS
    D, H, HD = D_MODEL, N_HEAD, HEAD_DIM
    BW, HS = B * W, N_HEAD * B * W
    P = [np.asarray(p, np.float32) for p in params]

    entries = []

    def add(name, a):
        entries.append((name, np.asarray(a, np.float32)))

    def add_full_mha(prefix, in_w, in_b, out_w, out_b, self_attn):
        scale = 1.0 / math.sqrt(HD)
        WqT, bq = in_w[0:D].T * scale, in_b[:, 0:D] * scale
        WkT, bk = in_w[D:2 * D].T, in_b[:, D:2 * D]
        WvT, bv = in_w[2 * D:3 * D].T, in_b[:, 2 * D:3 * D]
        if self_attn:   # fused QKV projection
            add(prefix + "_qkv_wT", np.concatenate([WqT, WkT, WvT], axis=1))
            add(prefix + "_qkv_b", np.concatenate([bq, bk, bv], axis=1))
        else:           # separate Q (from tgt) and fused KV (from memory)
            add(prefix + "_q_wT", WqT)
            add(prefix + "_q_b", bq)
            add(prefix + "_kv_wT", np.concatenate([WkT, WvT], axis=1))
            add(prefix + "_kv_b", np.concatenate([bk, bv], axis=1))
        add(prefix + "_out_wT", out_w.T)
        add(prefix + "_out_b", out_b)

    def add_ffn(prefix, l1_w, l1_b, l2_w, l2_b):
        add(prefix + "_l1_wT", l1_w.T)
        add(prefix + "_l1_b", l1_b)
        add(prefix + "_l2_wT", l2_w.T)
        add(prefix + "_l2_b", l2_b)

    def add_len1_selfattn(prefix, in_w, in_b, out_w, out_b):
        # tgt sequence length is 1 -> softmax over a single key == 1 exactly,
        # so self-attention == out_proj(V(x)): one fused linear map.
        WvT, bv = in_w[2 * D:3 * D].T, in_b[:, 2 * D:3 * D]
        add(prefix + "_sa_wT", WvT @ out_w.T)
        add(prefix + "_sa_b", bv @ out_w.T + out_b)

    add_full_mha("enc", *P[0:4], self_attn=True)
    add_ffn("enc", *P[4:8])
    add_len1_selfattn("d1", *P[8:12])
    add_full_mha("d1_ca", *P[12:16], self_attn=False)
    add_ffn("d1", *P[16:20])
    add_len1_selfattn("d2", *P[20:24])
    add_full_mha("d2_ca", *P[24:28], self_attn=False)
    add_ffn("d2", *P[28:32])
    # fcn weights lane-duplicated so the kernel produces x in both D/2 halves
    add("fcn_wT", np.concatenate([P[32].T, P[32].T], axis=1))
    add("fcn_b", np.concatenate([P[33], P[33]], axis=1))

    # ---- head-batched attention constants (heads along lanes of the scores) ----
    row_b = np.arange(BW) // W                         # batch id of each stacked row
    enc_mask = np.where(row_b[:, None] == row_b[None, :], 0.0, NEG_INF)
    add("enc_mask", np.tile(enc_mask.astype(np.float32), (1, H)))          # (BW, H*BW)
    cross_mask = np.where(np.arange(B)[:, None] == row_b[None, :], 0.0, NEG_INF)
    add("cross_mask", np.tile(cross_mask.astype(np.float32), (1, H)))      # (B, H*BW)

    hmask2 = np.zeros((HS, 2 * D), np.float32)         # head lane mask for tiled [K|V]
    seg_ind = np.zeros((HS, H), np.float32)            # per-head segment indicator
    for h in range(H):
        hmask2[h * BW:(h + 1) * BW, h * HD:(h + 1) * HD] = 1.0
        hmask2[h * BW:(h + 1) * BW, D + h * HD:D + (h + 1) * HD] = 1.0
        seg_ind[h * BW:(h + 1) * BW, h] = 1.0
    add("hmask2", hmask2)
    add("seg_ind", seg_ind)

    expand_hd = np.zeros((H, D), np.float32)           # (row,head) recip -> head lanes
    for h in range(H):
        expand_hd[h, h * HD:(h + 1) * HD] = 1.0
    add("expand_hd", expand_hd)

    add("bcast", (row_b[:, None] == np.arange(B)[None, :]).astype(np.float32))  # (BW, B)
    add("pe", np.tile(positional_encoding_np(W, D), (B, 1)))                    # (BW, D)
    add("lower_scale", np.concatenate([np.full((1, F), math.sqrt(F), np.float32),
                                       np.zeros((1, F), np.float32)], axis=1))
    add("half_scale", np.concatenate([np.zeros((1, F), np.float32),
                                      np.full((1, F), math.sqrt(F), np.float32)], axis=1))
    return entries


# ------------------------------------------------------------------
# Pallas kernel: whole TranAD forward (entire batch) in one grid step.
# ------------------------------------------------------------------
def _make_tranad_kernel(layout, batch):
    B, W, F = batch, N_WINDOW, FEATS
    D, H, HD = D_MODEL, N_HEAD, HEAD_DIM
    BW = B * W
    HS = H * BW
    TGT_OFF = ((BW + 7) // 8) * 8

    def kernel(acts_ref, slab_ref, out_ref):
        def getp(name):
            off, (r, c) = layout[name]
            return slab_ref[off:off + r, 0:c]

        src_dup = acts_ref[0:BW, :]                     # (BW, D) = [src | src]
        tgt2 = acts_ref[TGT_OFF:TGT_OFF + B, :]         # (B, D)  = [tgt | tgt]

        base = getp("pe") + src_dup * getp("lower_scale")   # phase-1 enc input (c = 0 folded)
        enc_mask = getp("enc_mask")       # additive block-diag mask, tiled per head (BW, HS)
        cross_mask = getp("cross_mask")   # (B, HS)
        hmask2 = getp("hmask2")           # (HS, 2D)
        seg_ind = getp("seg_ind")         # (HS, H)
        expand_hd = getp("expand_hd")     # (H, D)

        def tile_kv(kv):
            # (S, 2D) -> (H*S, 2D); sublane block h keeps only head h's K/V lanes
            return jnp.concatenate([kv] * H, axis=0) * hmask2

        def attend(q, kv_masked, mask):
            """All heads in one pass.  q (Sq, D); kv_masked (HS, 2D) = tiled [K|V]."""
            km = kv_masked[:, 0:D]                                          # head-masked K
            v_aug = jnp.concatenate([kv_masked[:, D:2 * D], seg_ind], axis=1)   # (HS, D+H)
            s = _mm_t(q, km) + mask                                         # (Sq, HS) f32
            # shared per-row shift: exact for per-head softmax, no overflow
            p = jnp.exp(s - jnp.max(s, axis=-1, keepdims=True))
            o = _mm(p, v_aug)                      # block-diag V -> per-head lanes + denominators
            recip = pl.reciprocal(o[:, D:D + H], approx=True)               # (Sq, H)
            return o[:, 0:D] * _mm(recip, expand_hd)                        # per-head normalised

        def mha_self(x, prefix, mask):
            proj = _mm(x, getp(prefix + "_qkv_wT")) + getp(prefix + "_qkv_b")   # (S, 3D)
            a = attend(proj[:, 0:D], tile_kv(proj[:, D:3 * D]), mask)
            return _mm(a, getp(prefix + "_out_wT")) + getp(prefix + "_out_b")

        def mha_cross(xq, mem, prefix, mask):
            q = _mm(xq, getp(prefix + "_q_wT")) + getp(prefix + "_q_b")
            kv = _mm(mem, getp(prefix + "_kv_wT")) + getp(prefix + "_kv_b")     # (S, 2D)
            a = attend(q, tile_kv(kv), mask)
            return _mm(a, getp(prefix + "_out_wT")) + getp(prefix + "_out_b")

        def ffn(x, prefix):
            h = _mm(x, getp(prefix + "_l1_wT")) + getp(prefix + "_l1_b")
            h = jnp.where(h >= 0, h, 0.01 * h)                                  # LeakyReLU
            return _mm(h, getp(prefix + "_l2_wT")) + getp(prefix + "_l2_b")

        def encoder_layer(x):
            x = x + mha_self(x, "enc", enc_mask)
            return x + ffn(x, "enc")

        def decoder_layer(t, mem, prefix):
            # tgt length == 1 => self-attention == out_proj(V(t)) exactly (softmax over 1 key)
            t = t + _mm(t, getp(prefix + "_sa_wT")) + getp(prefix + "_sa_b")
            t = t + mha_cross(t, mem, prefix + "_ca", cross_mask)
            return t + ffn(t, prefix)

        def fcn(t):
            # Linear + Sigmoid; sigmoid via EUP tanh (no divide), output in [0, 1]
            z = _mm(t, getp("fcn_wT")) + getp("fcn_b")
            return 0.5 * (jnp.tanh(0.5 * z) + 1.0)

        # TODO(synk): all Dropout(p=0.1) layers (PositionalEncoding / encoder / decoder)
        # are identity in eval mode and therefore omitted.

        # ---- phase 1: anomaly-score channel c = 0 (folded into `base`)
        mem1 = encoder_layer(base)
        x1 = fcn(decoder_layer(tgt2, mem1, "d1"))          # (B, D), result in both halves

        # ---- phase 2: c = (x1 - src)**2, scaled into the upper feature half
        x1_rows = _mm_f32(getp("bcast"), x1)               # broadcast x1[b] over its W rows
        mem2 = encoder_layer(base + (x1_rows - src_dup) ** 2 * getp("half_scale"))
        x2 = fcn(decoder_layer(tgt2, mem2, "d2"))

        out_ref[...] = jnp.concatenate([x1, x2], axis=0)   # single full-block store (2B, D)

    return kernel


# ------------------------------------------------------------------
# Model build (one-time) + jitted forward wrapper
# ------------------------------------------------------------------
def build_tranad(params, batch):
    """Fuse + pack parameters once; return (jitted forward, packed slab)."""
    B, W, F = batch, N_WINDOW, FEATS
    D = D_MODEL
    BW = B * W
    tgt_off = ((BW + 7) // 8) * 8
    act_rows = tgt_off + 8

    slab, layout = _pack_slab(_derive_slab_entries(params, batch))
    kernel = _make_tranad_kernel(layout, batch)
    slab_shape = slab.shape

    @jax.jit
    def forward(src, tgt, slab):
        """src (W, B, F), tgt (1, B, F) -> (x1, x2), each (1, B, F) (torch layout)."""
        src_flat = jnp.transpose(src, (1, 0, 2)).reshape(BW, F).astype(jnp.float32)
        src_dup = jnp.concatenate([src_flat, src_flat], axis=1)        # (BW, 2F)
        tgt_dup = jnp.concatenate([tgt[0], tgt[0]], axis=1).astype(jnp.float32)   # (B, 2F)
        acts = jnp.zeros((act_rows, D), jnp.float32)
        acts = acts.at[0:BW, :].set(src_dup).at[tgt_off:tgt_off + B, :].set(tgt_dup)

        out = pl.pallas_call(
            kernel,
            grid=(1,),                                  # whole batch in a single step
            in_specs=[pl.BlockSpec((act_rows, D), lambda i: (0, 0)),
                      pl.BlockSpec(slab_shape, lambda i: (0, 0))],
            out_specs=pl.BlockSpec((2 * B, D), lambda i: (0, 0)),
            out_shape=jax.ShapeDtypeStruct((2 * B, D), jnp.float32),
            compiler_params=pltpu.CompilerParams(
                dimension_semantics=("arbitrary",)),
        )(acts, slab)

        # back to PyTorch seq-major layout (1, B, F)
        return out[0:B, 0:F][None], out[B:2 * B, 0:F][None]

    return forward, slab


# ------------------------------------------------------------------
# Plain-JAX f32 reference (direct port of the original per-batch math)
# ------------------------------------------------------------------
def tranad_reference(src, tgt, params):
    W, B, F = src.shape
    d, hd = D_MODEL, HEAD_DIM
    P = list(params)
    pe = jnp.asarray(positional_encoding_np(W, d))

    def mha(xq, xkv, in_w, in_b, out_w, out_b):
        scale = 1.0 / math.sqrt(hd)
        q = xq @ in_w[0:d].T + in_b[:, 0:d]
        k = xkv @ in_w[d:2 * d].T + in_b[:, d:2 * d]
        v = xkv @ in_w[2 * d:3 * d].T + in_b[:, 2 * d:3 * d]
        outs = []
        for h in range(N_HEAD):
            lo, hi = h * hd, (h + 1) * hd
            p = jax.nn.softmax((q[:, lo:hi] * scale) @ k[:, lo:hi].T, axis=-1)
            outs.append(p @ v[:, lo:hi])
        return jnp.concatenate(outs, axis=1) @ out_w.T + out_b

    def leaky(x):
        return jnp.where(x >= 0, x, 0.01 * x)

    def enc_layer(x, p):
        x = x + mha(x, x, *p[0:4])
        h = leaky(x @ p[4].T + p[5])
        return x + h @ p[6].T + p[7]

    def dec_layer(t, mem, p):
        t = t + mha(t, t, *p[0:4])
        t = t + mha(t, mem, *p[4:8])
        h = leaky(t @ p[8].T + p[9])
        return t + h @ p[10].T + p[11]

    x1s, x2s = [], []
    for b in range(B):
        s = src[:, b, :]
        t2 = jnp.concatenate([tgt[:, b, :]] * 2, axis=1)

        def encode(c):
            x = jnp.concatenate([s, c], axis=1) * math.sqrt(F) + pe
            return enc_layer(x, P[0:8])

        x1 = jax.nn.sigmoid(dec_layer(t2, encode(jnp.zeros_like(s)), P[8:20]) @ P[32].T + P[33])
        x2 = jax.nn.sigmoid(dec_layer(t2, encode((x1 - s) ** 2), P[20:32]) @ P[32].T + P[33])
        x1s.append(x1)
        x2s.append(x2)
    return jnp.stack(x1s, axis=1), jnp.stack(x2s, axis=1)


if __name__ == "__main__":
    key = jax.random.PRNGKey(0)
    k_src, k_param = jax.random.split(key)

    src = jax.random.uniform(k_src, (N_WINDOW, BATCH, FEATS), jnp.float32)
    tgt = src[-1:, :, :]              # the element to reconstruct (1, B, F), as in TranAD
    params = init_params(k_param)

    # one-time build: parameter fusion + slab packing hoisted out of the call path
    forward, slab = build_tranad(params, BATCH)

    x1, x2 = forward(src, tgt, slab)
    jax.block_until_ready((x1, x2))

    assert x1.shape == (1, BATCH, FEATS) and x2.shape == (1, BATCH, FEATS)
    assert bool(jnp.all(jnp.isfinite(x1))) and bool(jnp.all(jnp.isfinite(x2)))
    assert bool(jnp.all((x1 >= 0) & (x1 <= 1))) and bool(jnp.all((x2 >= 0) & (x2 <= 1)))

    # numerical cross-check vs. the plain-JAX f32 port of the original per-batch math
    # (kernel uses bf16 MXU inputs + approx reciprocals, hence the 4e-2 tolerance)
    r1, r2 = tranad_reference(src, tgt, params)
    err = max(float(jnp.max(jnp.abs(x1 - r1))), float(jnp.max(jnp.abs(x2 - r2))))
    assert err < 4e-2, f"kernel/reference mismatch: {err}"

    print("KERNEL_OK")
</pallas_src>

<mosaic_0001>
module attributes {stable_mosaic.version = 11 : i64} {
  func.func @kernel(%arg0: i32, %arg1: memref<32x8xf32, #tpu.memory_space<vmem>>, %arg2: memref<560x128xf32, #tpu.memory_space<vmem>>, %arg3: memref<4x8xf32, #tpu.memory_space<vmem>>) attributes {dimension_semantics = [#tpu.dimension_semantics<arbitrary>], iteration_bounds = array<i64: 1>, scalar_prefetch = 0 : i64, scratch_operands = 0 : i64, tpu.core_type = #tpu.core_type<tc>, window_params = [{pipeline_mode = #tpu.pipeline_mode<synchronous>, transform_indices = @transform_0, window_bounds = array<i64: 32, 8>}, {pipeline_mode = #tpu.pipeline_mode<synchronous>, transform_indices = @transform_1, window_bounds = array<i64: 560, 128>}, {pipeline_mode = #tpu.pipeline_mode<synchronous>, transform_indices = @transform_2, window_bounds = array<i64: 4, 8>}]} {
    %c0 = arith.constant 0 : index
    %c0_0 = arith.constant 0 : index
    %0 = vector.load %arg1[%c0, %c0_0] : memref<32x8xf32, #tpu.memory_space<vmem>>, vector<20x8xf32>
    %c24 = arith.constant 24 : index
    %c0_1 = arith.constant 0 : index
    %1 = vector.load %arg1[%c24, %c0_1] : memref<32x8xf32, #tpu.memory_space<vmem>>, vector<2x8xf32>
    %c520 = arith.constant 520 : index
    %c0_2 = arith.constant 0 : index
    %2 = vector.load %arg2[%c520, %c0_2] : memref<560x128xf32, #tpu.memory_space<vmem>>, vector<20x8xf32>
    %c544 = arith.constant 544 : index
    %c0_3 = arith.constant 0 : index
    %3 = vector.load %arg2[%c544, %c0_3] : memref<560x128xf32, #tpu.memory_space<vmem>>, vector<1x8xf32>
    %4 = vector.broadcast %3 : vector<1x8xf32> to vector<20x8xf32>
    %5 = arith.mulf %0, %4 : vector<20x8xf32>
    %6 = arith.addf %2, %5 : vector<20x8xf32>
    %c296 = arith.constant 296 : index
    %c0_4 = arith.constant 0 : index
    %7 = vector.load %arg2[%c296, %c0_4] : memref<560x128xf32, #tpu.memory_space<vmem>>, vector<20x80xf32>
    %c320 = arith.constant 320 : index
    %c0_5 = arith.constant 0 : index
    %8 = vector.load %arg2[%c320, %c0_5] : memref<560x128xf32, #tpu.memory_space<vmem>>, vector<2x80xf32>
    %c328 = arith.constant 328 : index
    %c0_6 = arith.constant 0 : index
    %9 = vector.load %arg2[%c328, %c0_6] : memref<560x128xf32, #tpu.memory_space<vmem>>, vector<80x16xf32>
    %c408 = arith.constant 408 : index
    %c0_7 = arith.constant 0 : index
    %10 = vector.load %arg2[%c408, %c0_7] : memref<560x128xf32, #tpu.memory_space<vmem>>, vector<80x4xf32>
    %c488 = arith.constant 488 : index
    %c0_8 = arith.constant 0 : index
    %11 = vector.load %arg2[%c488, %c0_8] : memref<560x128xf32, #tpu.memory_space<vmem>>, vector<4x8xf32>
    %c0_9 = arith.constant 0 : index
    %c0_10 = arith.constant 0 : index
    %12 = vector.load %arg2[%c0_9, %c0_10] : memref<560x128xf32, #tpu.memory_space<vmem>>, vector<8x24xf32>
    %13 = arith.truncf %6 : vector<20x8xf32> to vector<20x8xbf16>
    %14 = arith.truncf %12 : vector<8x24xf32> to vector<8x24xbf16>
    %cst = arith.constant dense<0.000000e+00> : vector<20x24xf32>
    %15 = tpu.matmul %13, %14, %cst {dimension_numbers = #tpu.dot_dimension_numbers<[1], [0], [0], [1], [0, 0, 1, 1], [], []>} : vector<20x8xbf16>, vector<8x24xbf16>, vector<20x24xf32> -> vector<20x24xf32>
    %c8 = arith.constant 8 : index
    %c0_11 = arith.constant 0 : index
    %16 = vector.load %arg2[%c8, %c0_11] : memref<560x128xf32, #tpu.memory_space<vmem>>, vector<1x24xf32>
    %17 = vector.broadcast %16 : vector<1x24xf32> to vector<20x24xf32>
    %18 = arith.addf %15, %17 : vector<20x24xf32>
    %19 = vector.extract_strided_slice %18 {offsets = [0, 0], sizes = [20, 8], strides = [1, 1]} : vector<20x24xf32> to vector<20x8xf32>
    %20 = vector.extract_strided_slice %18 {offsets = [0, 8], sizes = [20, 16], strides = [1, 1]} : vector<20x24xf32> to vector<20x16xf32>
    %21 = tpu.concatenate %20, %20, %20, %20 in 0 : vector<20x16xf32>, vector<20x16xf32>, vector<20x16xf32>, vector<20x16xf32> -> vector<80x16xf32>
    %22 = arith.mulf %21, %9 : vector<80x16xf32>
    %23 = vector.extract_strided_slice %22 {offsets = [0, 0], sizes = [80, 8], strides = [1, 1]} : vector<80x16xf32> to vector<80x8xf32>
    %24 = vector.extract_strided_slice %22 {offsets = [0, 8], sizes = [80, 8], strides = [1, 1]} : vector<80x16xf32> to vector<80x8xf32>
    %25 = tpu.concatenate %24, %10 in 1 : vector<80x8xf32>, vector<80x4xf32> -> vector<80x12xf32>
    %26 = arith.truncf %19 : vector<20x8xf32> to vector<20x8xbf16>
    %27 = arith.truncf %23 : vector<80x8xf32> to vector<80x8xbf16>
    %cst_12 = arith.constant dense<0.000000e+00> : vector<20x80xf32>
    %28 = tpu.matmul %26, %27, %cst_12 {dimension_numbers = #tpu.dot_dimension_numbers<[1], [1], [0], [0], [0, 0, 1, 0], [], []>} : vector<20x8xbf16>, vector<80x8xbf16>, vector<20x80xf32> -> vector<20x80xf32>
    %29 = arith.addf %28, %7 : vector<20x80xf32>
    %cst_13 = arith.constant dense<0xFF800000> : vector<20xf32>
    %30 = vector.multi_reduction <maximumf>, %29, %cst_13 [1] : vector<20x80xf32> to vector<20xf32>
    %31 = vector.shape_cast %30 : vector<20xf32> to vector<20x1xf32>
    %32 = vector.broadcast %31 : vector<20x1xf32> to vector<20x80xf32>
    %33 = arith.subf %29, %32 : vector<20x80xf32>
    %34 = math.exp %33 : vector<20x80xf32>
    %35 = arith.truncf %34 : vector<20x80xf32> to vector<20x80xbf16>
    %36 = arith.truncf %25 : vector<80x12xf32> to vector<80x12xbf16>
    %cst_14 = arith.constant dense<0.000000e+00> : vector<20x12xf32>
    %37 = tpu.matmul %35, %36, %cst_14 {dimension_numbers = #tpu.dot_dimension_numbers<[1], [0], [0], [1], [0, 0, 1, 1], [], []>} : vector<20x80xbf16>, vector<80x12xbf16>, vector<20x12xf32> -> vector<20x12xf32>
    %38 = vector.extract_strided_slice %37 {offsets = [0, 8], sizes = [20, 4], strides = [1, 1]} : vector<20x12xf32> to vector<20x4xf32>
    %39 = tpu.reciprocal %38 {approx = true} : vector<20x4xf32> -> vector<20x4xf32>
    %40 = vector.extract_strided_slice %37 {offsets = [0, 0], sizes = [20, 8], strides = [1, 1]} : vector<20x12xf32> to vector<20x8xf32>
    %41 = arith.truncf %39 : vector<20x4xf32> to vector<20x4xbf16>
    %42 = arith.truncf %11 : vector<4x8xf32> to vector<4x8xbf16>
    %cst_15 = arith.constant dense<0.000000e+00> : vector<20x8xf32>
    %43 = tpu.matmul %41, %42, %cst_15 {dimension_numbers = #tpu.dot_dimension_numbers<[1], [0], [0], [1], [0, 0, 1, 1], [], []>} : vector<20x4xbf16>, vector<4x8xbf16>, vector<20x8xf32> -> vector<20x8xf32>
    %44 = arith.mulf %40, %43 : vector<20x8xf32>
    %c16 = arith.constant 16 : index
    %c0_16 = arith.constant 0 : index
    %45 = vector.load %arg2[%c16, %c0_16] : memref<560x128xf32, #tpu.memory_space<vmem>>, vector<8x8xf32>
    %46 = arith.truncf %44 : vector<20x8xf32> to vector<20x8xbf16>
    %47 = arith.truncf %45 : vector<8x8xf32> to vector<8x8xbf16>
    %cst_17 = arith.constant dense<0.000000e+00> : vector<20x8xf32>
    %48 = tpu.matmul %46, %47, %cst_17 {dimension_numbers = #tpu.dot_dimension_numbers<[1], [0], [0], [1], [0, 0, 1, 1], [], []>} : vector<20x8xbf16>, vector<8x8xbf16>, vector<20x8xf32> -> vector<20x8xf32>
    %c24_18 = arith.constant 24 : index
    %c0_19 = arith.constant 0 : index
    %49 = vector.load %arg2[%c24_18, %c0_19] : memref<560x128xf32, #tpu.memory_space<vmem>>, vector<1x8xf32>
    %50 = vector.broadcast %49 : vector<1x8xf32> to vector<20x8xf32>
    %51 = arith.addf %48, %50 : vector<20x8xf32>
    %52 = arith.addf %6, %51 : vector<20x8xf32>
    %c32 = arith.constant 32 : index
    %c0_20 = arith.constant 0 : index
    %53 = vector.load %arg2[%c32, %c0_20] : memref<560x128xf32, #tpu.memory_space<vmem>>, vector<8x16xf32>
    %54 = arith.truncf %52 : vector<20x8xf32> to vector<20x8xbf16>
    %55 = arith.truncf %53 : vector<8x16xf32> to vector<8x16xbf16>
    %cst_21 = arith.constant dense<0.000000e+00> : vector<20x16xf32>
    %56 = tpu.matmul %54, %55, %cst_21 {dimension_numbers = #tpu.dot_dimension_numbers<[1], [0], [0], [1], [0, 0, 1, 1], [], []>} : vector<20x8xbf16>, vector<8x16xbf16>, vector<20x16xf32> -> vector<20x16xf32>
    %c40 = arith.constant 40 : index
    %c0_22 = arith.constant 0 : index
    %57 = vector.load %arg2[%c40, %c0_22] : memref<560x128xf32, #tpu.memory_space<vmem>>, vector<1x16xf32>
    %58 = vector.broadcast %57 : vector<1x16xf32> to vector<20x16xf32>
    %59 = arith.addf %56, %58 : vector<20x16xf32>
    %cst_23 = arith.constant 0.000000e+00 : f32
    %60 = vector.broadcast %cst_23 : f32 to vector<20x16xf32>
    %61 = arith.cmpf oge, %59, %60 : vector<20x16xf32>
    %cst_24 = arith.constant 0.00999999977 : f32
    %62 = vector.broadcast %cst_24 : f32 to vector<20x16xf32>
    %63 = arith.mulf %62, %59 : vector<20x16xf32>
    %64 = arith.select %61, %59, %63 : vector<20x16xi1>, vector<20x16xf32>
    %c48 = arith.constant 48 : index
    %c0_25 = arith.constant 0 : index
    %65 = vector.load %arg2[%c48, %c0_25] : memref<560x128xf32, #tpu.memory_space<vmem>>, vector<16x8xf32>
    %66 = arith.truncf %64 : vector<20x16xf32> to vector<20x16xbf16>
    %67 = arith.truncf %65 : vector<16x8xf32> to vector<16x8xbf16>
    %cst_26 = arith.constant dense<0.000000e+00> : vector<20x8xf32>
    %68 = tpu.matmul %66, %67, %cst_26 {dimension_numbers = #tpu.dot_dimension_numbers<[1], [0], [0], [1], [0, 0, 1, 1], [], []>} : vector<20x16xbf16>, vector<16x8xbf16>, vector<20x8xf32> -> vector<20x8xf32>
    %c64 = arith.constant 64 : index
    %c0_27 = arith.constant 0 : index
    %69 = vector.load %arg2[%c64, %c0_27] : memref<560x128xf32, #tpu.memory_space<vmem>>, vector<1x8xf32>
    %70 = vector.broadcast %69 : vector<1x8xf32> to vector<20x8xf32>
    %71 = arith.addf %68, %70 : vector<20x8xf32>
    %72 = arith.addf %52, %71 : vector<20x8xf32>
    %c72 = arith.constant 72 : index
    %c0_28 = arith.constant 0 : index
    %73 = vector.load %arg2[%c72, %c0_28] : memref<560x128xf32, #tpu.memory_space<vmem>>, vector<8x8xf32>
    %74 = arith.truncf %1 : vector<2x8xf32> to vector<2x8xbf16>
    %75 = arith.truncf %73 : vector<8x8xf32> to vector<8x8xbf16>
    %cst_29 = arith.constant dense<0.000000e+00> : vector<2x8xf32>
    %76 = tpu.matmul %74, %75, %cst_29 {dimension_numbers = #tpu.dot_dimension_numbers<[1], [0], [0], [1], [0, 0, 1, 1], [], []>} : vector<2x8xbf16>, vector<8x8xbf16>, vector<2x8xf32> -> vector<2x8xf32>
    %77 = arith.addf %1, %76 : vector<2x8xf32>
    %c80 = arith.constant 80 : index
    %c0_30 = arith.constant 0 : index
    %78 = vector.load %arg2[%c80, %c0_30] : memref<560x128xf32, #tpu.memory_space<vmem>>, vector<1x8xf32>
    %79 = vector.broadcast %78 : vector<1x8xf32> to vector<2x8xf32>
    %80 = arith.addf %77, %79 : vector<2x8xf32>
    %c88 = arith.constant 88 : index
    %c0_31 = arith.constant 0 : index
    %81 = vector.load %arg2[%c88, %c0_31] : memref<560x128xf32, #tpu.memory_space<vmem>>, vector<8x8xf32>
    %82 = arith.truncf %80 : vector<2x8xf32> to vector<2x8xbf16>
    %83 = arith.truncf %81 : vector<8x8xf32> to vector<8x8xbf16>
    %cst_32 = arith.constant dense<0.000000e+00> : vector<2x8xf32>
    %84 = tpu.matmul %82, %83, %cst_32 {dimension_numbers = #tpu.dot_dimension_numbers<[1], [0], [0], [1], [0, 0, 1, 1], [], []>} : vector<2x8xbf16>, vector<8x8xbf16>, vector<2x8xf32> -> vector<2x8xf32>
    %c96 = arith.constant 96 : index
    %c0_33 = arith.constant 0 : index
    %85 = vector.load %arg2[%c96, %c0_33] : memref<560x128xf32, #tpu.memory_space<vmem>>, vector<1x8xf32>
    %86 = vector.broadcast %85 : vector<1x8xf32> to vector<2x8xf32>
    %87 = arith.addf %84, %86 : vector<2x8xf32>
    %c104 = arith.constant 104 : index
    %c0_34 = arith.constant 0 : index
    %88 = vector.load %arg2[%c104, %c0_34] : memref<560x128xf32, #tpu.memory_space<vmem>>, vector<8x16xf32>
    %89 = arith.truncf %72 : vector<20x8xf32> to vector<20x8xbf16>
    %90 = arith.truncf %88 : vector<8x16xf32> to vector<8x16xbf16>
    %cst_35 = arith.constant dense<0.000000e+00> : vector<20x16xf32>
    %91 = tpu.matmul %89, %90, %cst_35 {dimension_numbers = #tpu.dot_dimension_numbers<[1], [0], [0], [1], [0, 0, 1, 1], [], []>} : vector<20x8xbf16>, vector<8x16xbf16>, vector<20x16xf32> -> vector<20x16xf32>
    %c112 = arith.constant 112 : index
    %c0_36 = arith.constant 0 : index
    %92 = vector.load %arg2[%c112, %c0_36] : memref<560x128xf32, #tpu.memory_space<vmem>>, vector<1x16xf32>
    %93 = vector.broadcast %92 : vector<1x16xf32> to vector<20x16xf32>
    %94 = arith.addf %91, %93 : vector<20x16xf32>
    %95 = tpu.concatenate %94, %94, %94, %94 in 0 : vector<20x16xf32>, vector<20x16xf32>, vector<20x16xf32>, vector<20x16xf32> -> vector<80x16xf32>
    %96 = arith.mulf %95, %9 : vector<80x16xf32>
    %97 = vector.extract_strided_slice %96 {offsets = [0, 0], sizes = [80, 8], strides = [1, 1]} : vector<80x16xf32> to vector<80x8xf32>
    %98 = vector.extract_strided_slice %96 {offsets = [0, 8], sizes = [80, 8], strides = [1, 1]} : vector<80x16xf32> to vector<80x8xf32>
    %99 = tpu.concatenate %98, %10 in 1 : vector<80x8xf32>, vector<80x4xf32> -> vector<80x12xf32>
    %100 = arith.truncf %87 : vector<2x8xf32> to vector<2x8xbf16>
    %101 = arith.truncf %97 : vector<80x8xf32> to vector<80x8xbf16>
    %cst_37 = arith.constant dense<0.000000e+00> : vector<2x80xf32>
    %102 = tpu.matmul %100, %101, %cst_37 {dimension_numbers = #tpu.dot_dimension_numbers<[1], [1], [0], [0], [0, 0, 1, 0], [], []>} : vector<2x8xbf16>, vector<80x8xbf16>, vector<2x80xf32> -> vector<2x80xf32>
    %103 = arith.addf %102, %8 : vector<2x80xf32>
    %cst_38 = arith.constant dense<0xFF800000> : vector<2xf32>
    %104 = vector.multi_reduction <maximumf>, %103, %cst_38 [1] : vector<2x80xf32> to vector<2xf32>
    %105 = vector.shape_cast %104 : vector<2xf32> to vector<2x1xf32>
    %106 = vector.broadcast %105 : vector<2x1xf32> to vector<2x80xf32>
    %107 = arith.subf %103, %106 : vector<2x80xf32>
    %108 = math.exp %107 : vector<2x80xf32>
    %109 = arith.truncf %108 : vector<2x80xf32> to vector<2x80xbf16>
    %110 = arith.truncf %99 : vector<80x12xf32> to vector<80x12xbf16>
    %cst_39 = arith.constant dense<0.000000e+00> : vector<2x12xf32>
    %111 = tpu.matmul %109, %110, %cst_39 {dimension_numbers = #tpu.dot_dimension_numbers<[1], [0], [0], [1], [0, 0, 1, 1], [], []>} : vector<2x80xbf16>, vector<80x12xbf16>, vector<2x12xf32> -> vector<2x12xf32>
    %112 = vector.extract_strided_slice %111 {offsets = [0, 8], sizes = [2, 4], strides = [1, 1]} : vector<2x12xf32> to vector<2x4xf32>
    %113 = tpu.reciprocal %112 {approx = true} : vector<2x4xf32> -> vector<2x4xf32>
    %114 = vector.extract_strided_slice %111 {offsets = [0, 0], sizes = [2, 8], strides = [1, 1]} : vector<2x12xf32> to vector<2x8xf32>
    %115 = arith.truncf %113 : vector<2x4xf32> to vector<2x4xbf16>
    %116 = arith.truncf %11 : vector<4x8xf32> to vector<4x8xbf16>
    %cst_40 = arith.constant dense<0.000000e+00> : vector<2x8xf32>
    %117 = tpu.matmul %115, %116, %cst_40 {dimension_numbers = #tpu.dot_dimension_numbers<[1], [0], [0], [1], [0, 0, 1, 1], [], []>} : vector<2x4xbf16>, vector<4x8xbf16>, vector<2x8xf32> -> vector<2x8xf32>
    %118 = arith.mulf %114, %117 : vector<2x8xf32>
    %c120 = arith.constant 120 : index
    %c0_41 = arith.constant 0 : index
    %119 = vector.load %arg2[%c120, %c0_41] : memref<560x128xf32, #tpu.memory_space<vmem>>, vector<8x8xf32>
    %120 = arith.truncf %118 : vector<2x8xf32> to vector<2x8xbf16>
    %121 = arith.truncf %119 : vector<8x8xf32> to vector<8x8xbf16>
    %cst_42 = arith.constant dense<0.000000e+00> : vector<2x8xf32>
    %122 = tpu.matmul %120, %121, %cst_42 {dimension_numbers = #tpu.dot_dimension_numbers<[1], [0], [0], [1], [0, 0, 1, 1], [], []>} : vector<2x8xbf16>, vector<8x8xbf16>, vector<2x8xf32> -> vector<2x8xf32>
    %c128 = arith.constant 128 : index
    %c0_43 = arith.constant 0 : index
    %123 = vector.load %arg2[%c128, %c0_43] : memref<560x128xf32, #tpu.memory_space<vmem>>, vector<1x8xf32>
    %124 = vector.broadcast %123 : vector<1x8xf32> to vector<2x8xf32>
    %125 = arith.addf %122, %124 : vector<2x8xf32>
    %126 = arith.addf %80, %125 : vector<2x8xf32>
    %c136 = arith.constant 136 : index
    %c0_44 = arith.constant 0 : index
    %127 = vector.load %arg2[%c136, %c0_44] : memref<560x128xf32, #tpu.memory_space<vmem>>, vector<8x16xf32>
    %128 = arith.truncf %126 : vector<2x8xf32> to vector<2x8xbf16>
    %129 = arith.truncf %127 : vector<8x16xf32> to vector<8x16xbf16>
    %cst_45 = arith.constant dense<0.000000e+00> : vector<2x16xf32>
    %130 = tpu.matmul %128, %129, %cst_45 {dimension_numbers = #tpu.dot_dimension_numbers<[1], [0], [0], [1], [0, 0, 1, 1], [], []>} : vector<2x8xbf16>, vector<8x16xbf16>, vector<2x16xf32> -> vector<2x16xf32>
    %c144 = arith.constant 144 : index
    %c0_46 = arith.constant 0 : index
    %131 = vector.load %arg2[%c144, %c0_46] : memref<560x128xf32, #tpu.memory_space<vmem>>, vector<1x16xf32>
    %132 = vector.broadcast %131 : vector<1x16xf32> to vector<2x16xf32>
    %133 = arith.addf %130, %132 : vector<2x16xf32>
    %cst_47 = arith.constant 0.000000e+00 : f32
    %134 = vector.broadcast %cst_47 : f32 to vector<2x16xf32>
    %135 = arith.cmpf oge, %133, %134 : vector<2x16xf32>
    %cst_48 = arith.constant 0.00999999977 : f32
    %136 = vector.broadcast %cst_48 : f32 to vector<2x16xf32>
    %137 = arith.mulf %136, %133 : vector<2x16xf32>
    %138 = arith.select %135, %133, %137 : vector<2x16xi1>, vector<2x16xf32>
    %c152 = arith.constant 152 : index
    %c0_49 = arith.constant 0 : index
    %139 = vector.load %arg2[%c152, %c0_49] : memref<560x128xf32, #tpu.memory_space<vmem>>, vector<16x8xf32>
    %140 = arith.truncf %138 : vector<2x16xf32> to vector<2x16xbf16>
    %141 = arith.truncf %139 : vector<16x8xf32> to vector<16x8xbf16>
    %cst_50 = arith.constant dense<0.000000e+00> : vector<2x8xf32>
    %142 = tpu.matmul %140, %141, %cst_50 {dimension_numbers = #tpu.dot_dimension_numbers<[1], [0], [0], [1], [0, 0, 1, 1], [], []>} : vector<2x16xbf16>, vector<16x8xbf16>, vector<2x8xf32> -> vector<2x8xf32>
    %c168 = arith.constant 168 : index
    %c0_51 = arith.constant 0 : index
    %143 = vector.load %arg2[%c168, %c0_51] : memref<560x128xf32, #tpu.memory_space<vmem>>, vector<1x8xf32>
    %144 = vector.broadcast %143 : vector<1x8xf32> to vector<2x8xf32>
    %145 = arith.addf %142, %144 : vector<2x8xf32>
    %146 = arith.addf %126, %145 : vector<2x8xf32>
    %c280 = arith.constant 280 : index
    %c0_52 = arith.constant 0 : index
    %147 = vector.load %arg2[%c280, %c0_52] : memref<560x128xf32, #tpu.memory_space<vmem>>, vector<8x8xf32>
    %148 = arith.truncf %146 : vector<2x8xf32> to vector<2x8xbf16>
    %149 = arith.truncf %147 : vector<8x8xf32> to vector<8x8xbf16>
    %cst_53 = arith.constant dense<0.000000e+00> : vector<2x8xf32>
    %150 = tpu.matmul %148, %149, %cst_53 {dimension_numbers = #tpu.dot_dimension_numbers<[1], [0], [0], [1], [0, 0, 1, 1], [], []>} : vector<2x8xbf16>, vector<8x8xbf16>, vector<2x8xf32> -> vector<2x8xf32>
    %c288 = arith.constant 288 : index
    %c0_54 = arith.constant 0 : index
    %151 = vector.load %arg2[%c288, %c0_54] : memref<560x128xf32, #tpu.memory_space<vmem>>, vector<1x8xf32>
    %152 = vector.broadcast %151 : vector<1x8xf32> to vector<2x8xf32>
    %153 = arith.addf %150, %152 : vector<2x8xf32>
    %cst_55 = arith.constant 5.000000e-01 : f32
    %154 = vector.broadcast %cst_55 : f32 to vector<2x8xf32>
    %155 = arith.mulf %154, %153 : vector<2x8xf32>
    %156 = math.tanh %155 : vector<2x8xf32>
    %cst_56 = arith.constant 1.000000e+00 : f32
    %157 = vector.broadcast %cst_56 : f32 to vector<2x8xf32>
    %158 = arith.addf %156, %157 : vector<2x8xf32>
    %cst_57 = arith.constant 5.000000e-01 : f32
    %159 = vector.broadcast %cst_57 : f32 to vector<2x8xf32>
    %160 = arith.mulf %159, %158 : vector<2x8xf32>
    %c496 = arith.constant 496 : index
    %c0_58 = arith.constant 0 : index
    %161 = vector.load %arg2[%c496, %c0_58] : memref<560x128xf32, #tpu.memory_space<vmem>>, vector<20x2xf32>
    %cst_59 = arith.constant dense<0.000000e+00> : vector<20x8xf32>
    %162 = tpu.matmul %161, %160, %cst_59 {dimension_numbers = #tpu.dot_dimension_numbers<[1], [0], [0], [1], [0, 0, 1, 1], [], []>} : vector<20x2xf32>, vector<2x8xf32>, vector<20x8xf32> -> vector<20x8xf32>
    %163 = arith.subf %162, %0 : vector<20x8xf32>
    %164 = arith.mulf %163, %163 : vector<20x8xf32>
    %c552 = arith.constant 552 : index
    %c0_60 = arith.constant 0 : index
    %165 = vector.load %arg2[%c552, %c0_60] : memref<560x128xf32, #tpu.memory_space<vmem>>, vector<1x8xf32>
    %166 = vector.broadcast %165 : vector<1x8xf32> to vector<20x8xf32>
    %167 = arith.mulf %164, %166 : vector<20x8xf32>
    %168 = arith.addf %6, %167 : vector<20x8xf32>
    %c0_61 = arith.constant 0 : index
    %c0_62 = arith.constant 0 : index
    %169 = vector.load %arg2[%c0_61, %c0_62] : memref<560x128xf32, #tpu.memory_space<vmem>>, vector<8x24xf32>
    %170 = arith.truncf %168 : vector<20x8xf32> to vector<20x8xbf16>
    %171 = arith.truncf %169 : vector<8x24xf32> to vector<8x24xbf16>
    %cst_63 = arith.constant dense<0.000000e+00> : vector<20x24xf32>
    %172 = tpu.matmul %170, %171, %cst_63 {dimension_numbers = #tpu.dot_dimension_numbers<[1], [0], [0], [1], [0, 0, 1, 1], [], []>} : vector<20x8xbf16>, vector<8x24xbf16>, vector<20x24xf32> -> vector<20x24xf32>
    %c8_64 = arith.constant 8 : index
    %c0_65 = arith.constant 0 : index
    %173 = vector.load %arg2[%c8_64, %c0_65] : memref<560x128xf32, #tpu.memory_space<vmem>>, vector<1x24xf32>
    %174 = vector.broadcast %173 : vector<1x24xf32> to vector<20x24xf32>
    %175 = arith.addf %172, %174 : vector<20x24xf32>
    %176 = vector.extract_strided_slice %175 {offsets = [0, 0], sizes = [20, 8], strides = [1, 1]} : vector<20x24xf32> to vector<20x8xf32>
    %177 = vector.extract_strided_slice %175 {offsets = [0, 8], sizes = [20, 16], strides = [1, 1]} : vector<20x24xf32> to vector<20x16xf32>
    %178 = tpu.concatenate %177, %177, %177, %177 in 0 : vector<20x16xf32>, vector<20x16xf32>, vector<20x16xf32>, vector<20x16xf32> -> vector<80x16xf32>
    %179 = arith.mulf %178, %9 : vector<80x16xf32>
    %180 = vector.extract_strided_slice %179 {offsets = [0, 0], sizes = [80, 8], strides = [1, 1]} : vector<80x16xf32> to vector<80x8xf32>
    %181 = vector.extract_strided_slice %179 {offsets = [0, 8], sizes = [80, 8], strides = [1, 1]} : vector<80x16xf32> to vector<80x8xf32>
    %182 = tpu.concatenate %181, %10 in 1 : vector<80x8xf32>, vector<80x4xf32> -> vector<80x12xf32>
    %183 = arith.truncf %176 : vector<20x8xf32> to vector<20x8xbf16>
    %184 = arith.truncf %180 : vector<80x8xf32> to vector<80x8xbf16>
    %cst_66 = arith.constant dense<0.000000e+00> : vector<20x80xf32>
    %185 = tpu.matmul %183, %184, %cst_66 {dimension_numbers = #tpu.dot_dimension_numbers<[1], [1], [0], [0], [0, 0, 1, 0], [], []>} : vector<20x8xbf16>, vector<80x8xbf16>, vector<20x80xf32> -> vector<20x80xf32>
    %186 = arith.addf %185, %7 : vector<20x80xf32>
    %cst_67 = arith.constant dense<0xFF800000> : vector<20xf32>
    %187 = vector.multi_reduction <maximumf>, %186, %cst_67 [1] : vector<20x80xf32> to vector<20xf32>
    %188 = vector.shape_cast %187 : vector<20xf32> to vector<20x1xf32>
    %189 = vector.broadcast %188 : vector<20x1xf32> to vector<20x80xf32>
    %190 = arith.subf %186, %189 : vector<20x80xf32>
    %191 = math.exp %190 : vector<20x80xf32>
    %192 = arith.truncf %191 : vector<20x80xf32> to vector<20x80xbf16>
    %193 = arith.truncf %182 : vector<80x12xf32> to vector<80x12xbf16>
    %cst_68 = arith.constant dense<0.000000e+00> : vector<20x12xf32>
    %194 = tpu.matmul %192, %193, %cst_68 {dimension_numbers = #tpu.dot_dimension_numbers<[1], [0], [0], [1], [0, 0, 1, 1], [], []>} : vector<20x80xbf16>, vector<80x12xbf16>, vector<20x12xf32> -> vector<20x12xf32>
    %195 = vector.extract_strided_slice %194 {offsets = [0, 8], sizes = [20, 4], strides = [1, 1]} : vector<20x12xf32> to vector<20x4xf32>
    %196 = tpu.reciprocal %195 {approx = true} : vector<20x4xf32> -> vector<20x4xf32>
    %197 = vector.extract_strided_slice %194 {offsets = [0, 0], sizes = [20, 8], strides = [1, 1]} : vector<20x12xf32> to vector<20x8xf32>
    %198 = arith.truncf %196 : vector<20x4xf32> to vector<20x4xbf16>
    %199 = arith.truncf %11 : vector<4x8xf32> to vector<4x8xbf16>
    %cst_69 = arith.constant dense<0.000000e+00> : vector<20x8xf32>
    %200 = tpu.matmul %198, %199, %cst_69 {dimension_numbers = #tpu.dot_dimension_numbers<[1], [0], [0], [1], [0, 0, 1, 1], [], []>} : vector<20x4xbf16>, vector<4x8xbf16>, vector<20x8xf32> -> vector<20x8xf32>
    %201 = arith.mulf %197, %200 : vector<20x8xf32>
    %c16_70 = arith.constant 16 : index
    %c0_71 = arith.constant 0 : index
    %202 = vector.load %arg2[%c16_70, %c0_71] : memref<560x128xf32, #tpu.memory_space<vmem>>, vector<8x8xf32>
    %203 = arith.truncf %201 : vector<20x8xf32> to vector<20x8xbf16>
    %204 = arith.truncf %202 : vector<8x8xf32> to vector<8x8xbf16>
    %cst_72 = arith.constant dense<0.000000e+00> : vector<20x8xf32>
    %205 = tpu.matmul %203, %204, %cst_72 {dimension_numbers = #tpu.dot_dimension_numbers<[1], [0], [0], [1], [0, 0, 1, 1], [], []>} : vector<20x8xbf16>, vector<8x8xbf16>, vector<20x8xf32> -> vector<20x8xf32>
    %c24_73 = arith.constant 24 : index
    %c0_74 = arith.constant 0 : index
    %206 = vector.load %arg2[%c24_73, %c0_74] : memref<560x128xf32, #tpu.memory_space<vmem>>, vector<1x8xf32>
    %207 = vector.broadcast %206 : vector<1x8xf32> to vector<20x8xf32>
    %208 = arith.addf %205, %207 : vector<20x8xf32>
    %209 = arith.addf %168, %208 : vector<20x8xf32>
    %c32_75 = arith.constant 32 : index
    %c0_76 = arith.constant 0 : index
    %210 = vector.load %arg2[%c32_75, %c0_76] : memref<560x128xf32, #tpu.memory_space<vmem>>, vector<8x16xf32>
    %211 = arith.truncf %209 : vector<20x8xf32> to vector<20x8xbf16>
    %212 = arith.truncf %210 : vector<8x16xf32> to vector<8x16xbf16>
    %cst_77 = arith.constant dense<0.000000e+00> : vector<20x16xf32>
    %213 = tpu.matmul %211, %212, %cst_77 {dimension_numbers = #tpu.dot_dimension_numbers<[1], [0], [0], [1], [0, 0, 1, 1], [], []>} : vector<20x8xbf16>, vector<8x16xbf16>, vector<20x16xf32> -> vector<20x16xf32>
    %c40_78 = arith.constant 40 : index
    %c0_79 = arith.constant 0 : index
    %214 = vector.load %arg2[%c40_78, %c0_79] : memref<560x128xf32, #tpu.memory_space<vmem>>, vector<1x16xf32>
    %215 = vector.broadcast %214 : vector<1x16xf32> to vector<20x16xf32>
    %216 = arith.addf %213, %215 : vector<20x16xf32>
    %cst_80 = arith.constant 0.000000e+00 : f32
    %217 = vector.broadcast %cst_80 : f32 to vector<20x16xf32>
    %218 = arith.cmpf oge, %216, %217 : vector<20x16xf32>
    %cst_81 = arith.constant 0.00999999977 : f32
    %219 = vector.broadcast %cst_81 : f32 to vector<20x16xf32>
    %220 = arith.mulf %219, %216 : vector<20x16xf32>
    %221 = arith.select %218, %216, %220 : vector<20x16xi1>, vector<20x16xf32>
    %c48_82 = arith.constant 48 : index
    %c0_83 = arith.constant 0 : index
    %222 = vector.load %arg2[%c48_82, %c0_83] : memref<560x128xf32, #tpu.memory_space<vmem>>, vector<16x8xf32>
    %223 = arith.truncf %221 : vector<20x16xf32> to vector<20x16xbf16>
    %224 = arith.truncf %222 : vector<16x8xf32> to vector<16x8xbf16>
    %cst_84 = arith.constant dense<0.000000e+00> : vector<20x8xf32>
    %225 = tpu.matmul %223, %224, %cst_84 {dimension_numbers = #tpu.dot_dimension_numbers<[1], [0], [0], [1], [0, 0, 1, 1], [], []>} : vector<20x16xbf16>, vector<16x8xbf16>, vector<20x8xf32> -> vector<20x8xf32>
    %c64_85 = arith.constant 64 : index
    %c0_86 = arith.constant 0 : index
    %226 = vector.load %arg2[%c64_85, %c0_86] : memref<560x128xf32, #tpu.memory_space<vmem>>, vector<1x8xf32>
    %227 = vector.broadcast %226 : vector<1x8xf32> to vector<20x8xf32>
    %228 = arith.addf %225, %227 : vector<20x8xf32>
    %229 = arith.addf %209, %228 : vector<20x8xf32>
    %c176 = arith.constant 176 : index
    %c0_87 = arith.constant 0 : index
    %230 = vector.load %arg2[%c176, %c0_87] : memref<560x128xf32, #tpu.memory_space<vmem>>, vector<8x8xf32>
    %231 = arith.truncf %1 : vector<2x8xf32> to vector<2x8xbf16>
    %232 = arith.truncf %230 : vector<8x8xf32> to vector<8x8xbf16>
    %cst_88 = arith.constant dense<0.000000e+00> : vector<2x8xf32>
    %233 = tpu.matmul %231, %232, %cst_88 {dimension_numbers = #tpu.dot_dimension_numbers<[1], [0], [0], [1], [0, 0, 1, 1], [], []>} : vector<2x8xbf16>, vector<8x8xbf16>, vector<2x8xf32> -> vector<2x8xf32>
    %234 = arith.addf %1, %233 : vector<2x8xf32>
    %c184 = arith.constant 184 : index
    %c0_89 = arith.constant 0 : index
    %235 = vector.load %arg2[%c184, %c0_89] : memref<560x128xf32, #tpu.memory_space<vmem>>, vector<1x8xf32>
    %236 = vector.broadcast %235 : vector<1x8xf32> to vector<2x8xf32>
    %237 = arith.addf %234, %236 : vector<2x8xf32>
    %c192 = arith.constant 192 : index
    %c0_90 = arith.constant 0 : index
    %238 = vector.load %arg2[%c192, %c0_90] : memref<560x128xf32, #tpu.memory_space<vmem>>, vector<8x8xf32>
    %239 = arith.truncf %237 : vector<2x8xf32> to vector<2x8xbf16>
    %240 = arith.truncf %238 : vector<8x8xf32> to vector<8x8xbf16>
    %cst_91 = arith.constant dense<0.000000e+00> : vector<2x8xf32>
    %241 = tpu.matmul %239, %240, %cst_91 {dimension_numbers = #tpu.dot_dimension_numbers<[1], [0], [0], [1], [0, 0, 1, 1], [], []>} : vector<2x8xbf16>, vector<8x8xbf16>, vector<2x8xf32> -> vector<2x8xf32>
    %c200 = arith.constant 200 : index
    %c0_92 = arith.constant 0 : index
    %242 = vector.load %arg2[%c200, %c0_92] : memref<560x128xf32, #tpu.memory_space<vmem>>, vector<1x8xf32>
    %243 = vector.broadcast %242 : vector<1x8xf32> to vector<2x8xf32>
    %244 = arith.addf %241, %243 : vector<2x8xf32>
    %c208 = arith.constant 208 : index
    %c0_93 = arith.constant 0 : index
    %245 = vector.load %arg2[%c208, %c0_93] : memref<560x128xf32, #tpu.memory_space<vmem>>, vector<8x16xf32>
    %246 = arith.truncf %229 : vector<20x8xf32> to vector<20x8xbf16>
    %247 = arith.truncf %245 : vector<8x16xf32> to vector<8x16xbf16>
    %cst_94 = arith.constant dense<0.000000e+00> : vector<20x16xf32>
    %248 = tpu.matmul %246, %247, %cst_94 {dimension_numbers = #tpu.dot_dimension_numbers<[1], [0], [0], [1], [0, 0, 1, 1], [], []>} : vector<20x8xbf16>, vector<8x16xbf16>, vector<20x16xf32> -> vector<20x16xf32>
    %c216 = arith.constant 216 : index
    %c0_95 = arith.constant 0 : index
    %249 = vector.load %arg2[%c216, %c0_95] : memref<560x128xf32, #tpu.memory_space<vmem>>, vector<1x16xf32>
    %250 = vector.broadcast %249 : vector<1x16xf32> to vector<20x16xf32>
    %251 = arith.addf %248, %250 : vector<20x16xf32>
    %252 = tpu.concatenate %251, %251, %251, %251 in 0 : vector<20x16xf32>, vector<20x16xf32>, vector<20x16xf32>, vector<20x16xf32> -> vector<80x16xf32>
    %253 = arith.mulf %252, %9 : vector<80x16xf32>
    %254 = vector.extract_strided_slice %253 {offsets = [0, 0], sizes = [80, 8], strides = [1, 1]} : vector<80x16xf32> to vector<80x8xf32>
    %255 = vector.extract_strided_slice %253 {offsets = [0, 8], sizes = [80, 8], strides = [1, 1]} : vector<80x16xf32> to vector<80x8xf32>
    %256 = tpu.concatenate %255, %10 in 1 : vector<80x8xf32>, vector<80x4xf32> -> vector<80x12xf32>
    %257 = arith.truncf %244 : vector<2x8xf32> to vector<2x8xbf16>
    %258 = arith.truncf %254 : vector<80x8xf32> to vector<80x8xbf16>
    %cst_96 = arith.constant dense<0.000000e+00> : vector<2x80xf32>
    %259 = tpu.matmul %257, %258, %cst_96 {dimension_numbers = #tpu.dot_dimension_numbers<[1], [1], [0], [0], [0, 0, 1, 0], [], []>} : vector<2x8xbf16>, vector<80x8xbf16>, vector<2x80xf32> -> vector<2x80xf32>
    %260 = arith.addf %259, %8 : vector<2x80xf32>
    %cst_97 = arith.constant dense<0xFF800000> : vector<2xf32>
    %261 = vector.multi_reduction <maximumf>, %260, %cst_97 [1] : vector<2x80xf32> to vector<2xf32>
    %262 = vector.shape_cast %261 : vector<2xf32> to vector<2x1xf32>
    %263 = vector.broadcast %262 : vector<2x1xf32> to vector<2x80xf32>
    %264 = arith.subf %260, %263 : vector<2x80xf32>
    %265 = math.exp %264 : vector<2x80xf32>
    %266 = arith.truncf %265 : vector<2x80xf32> to vector<2x80xbf16>
    %267 = arith.truncf %256 : vector<80x12xf32> to vector<80x12xbf16>
    %cst_98 = arith.constant dense<0.000000e+00> : vector<2x12xf32>
    %268 = tpu.matmul %266, %267, %cst_98 {dimension_numbers = #tpu.dot_dimension_numbers<[1], [0], [0], [1], [0, 0, 1, 1], [], []>} : vector<2x80xbf16>, vector<80x12xbf16>, vector<2x12xf32> -> vector<2x12xf32>
    %269 = vector.extract_strided_slice %268 {offsets = [0, 8], sizes = [2, 4], strides = [1, 1]} : vector<2x12xf32> to vector<2x4xf32>
    %270 = tpu.reciprocal %269 {approx = true} : vector<2x4xf32> -> vector<2x4xf32>
    %271 = vector.extract_strided_slice %268 {offsets = [0, 0], sizes = [2, 8], strides = [1, 1]} : vector<2x12xf32> to vector<2x8xf32>
    %272 = arith.truncf %270 : vector<2x4xf32> to vector<2x4xbf16>
    %273 = arith.truncf %11 : vector<4x8xf32> to vector<4x8xbf16>
    %cst_99 = arith.constant dense<0.000000e+00> : vector<2x8xf32>
    %274 = tpu.matmul %272, %273, %cst_99 {dimension_numbers = #tpu.dot_dimension_numbers<[1], [0], [0], [1], [0, 0, 1, 1], [], []>} : vector<2x4xbf16>, vector<4x8xbf16>, vector<2x8xf32> -> vector<2x8xf32>
    %275 = arith.mulf %271, %274 : vector<2x8xf32>
    %c224 = arith.constant 224 : index
    %c0_100 = arith.constant 0 : index
    %276 = vector.load %arg2[%c224, %c0_100] : memref<560x128xf32, #tpu.memory_space<vmem>>, vector<8x8xf32>
    %277 = arith.truncf %275 : vector<2x8xf32> to vector<2x8xbf16>
    %278 = arith.truncf %276 : vector<8x8xf32> to vector<8x8xbf16>
    %cst_101 = arith.constant dense<0.000000e+00> : vector<2x8xf32>
    %279 = tpu.matmul %277, %278, %cst_101 {dimension_numbers = #tpu.dot_dimension_numbers<[1], [0], [0], [1], [0, 0, 1, 1], [], []>} : vector<2x8xbf16>, vector<8x8xbf16>, vector<2x8xf32> -> vector<2x8xf32>
    %c232 = arith.constant 232 : index
    %c0_102 = arith.constant 0 : index
    %280 = vector.load %arg2[%c232, %c0_102] : memref<560x128xf32, #tpu.memory_space<vmem>>, vector<1x8xf32>
    %281 = vector.broadcast %280 : vector<1x8xf32> to vector<2x8xf32>
    %282 = arith.addf %279, %281 : vector<2x8xf32>
    %283 = arith.addf %237, %282 : vector<2x8xf32>
    %c240 = arith.constant 240 : index
    %c0_103 = arith.constant 0 : index
    %284 = vector.load %arg2[%c240, %c0_103] : memref<560x128xf32, #tpu.memory_space<vmem>>, vector<8x16xf32>
    %285 = arith.truncf %283 : vector<2x8xf32> to vector<2x8xbf16>
    %286 = arith.truncf %284 : vector<8x16xf32> to vector<8x16xbf16>
    %cst_104 = arith.constant dense<0.000000e+00> : vector<2x16xf32>
    %287 = tpu.matmul %285, %286, %cst_104 {dimension_numbers = #tpu.dot_dimension_numbers<[1], [0], [0], [1], [0, 0, 1, 1], [], []>} : vector<2x8xbf16>, vector<8x16xbf16>, vector<2x16xf32> -> vector<2x16xf32>
    %c248 = arith.constant 248 : index
    %c0_105 = arith.constant 0 : index
    %288 = vector.load %arg2[%c248, %c0_105] : memref<560x128xf32, #tpu.memory_space<vmem>>, vector<1x16xf32>
    %289 = vector.broadcast %288 : vector<1x16xf32> to vector<2x16xf32>
    %290 = arith.addf %287, %289 : vector<2x16xf32>
    %cst_106 = arith.constant 0.000000e+00 : f32
    %291 = vector.broadcast %cst_106 : f32 to vector<2x16xf32>
    %292 = arith.cmpf oge, %290, %291 : vector<2x16xf32>
    %cst_107 = arith.constant 0.00999999977 : f32
    %293 = vector.broadcast %cst_107 : f32 to vector<2x16xf32>
    %294 = arith.mulf %293, %290 : vector<2x16xf32>
    %295 = arith.select %292, %290, %294 : vector<2x16xi1>, vector<2x16xf32>
    %c256 = arith.constant 256 : index
    %c0_108 = arith.constant 0 : index
    %296 = vector.load %arg2[%c256, %c0_108] : memref<560x128xf32, #tpu.memory_space<vmem>>, vector<16x8xf32>
    %297 = arith.truncf %295 : vector<2x16xf32> to vector<2x16xbf16>
    %298 = arith.truncf %296 : vector<16x8xf32> to vector<16x8xbf16>
    %cst_109 = arith.constant dense<0.000000e+00> : vector<2x8xf32>
    %299 = tpu.matmul %297, %298, %cst_109 {dimension_numbers = #tpu.dot_dimension_numbers<[1], [0], [0], [1], [0, 0, 1, 1], [], []>} : vector<2x16xbf16>, vector<16x8xbf16>, vector<2x8xf32> -> vector<2x8xf32>
    %c272 = arith.constant 272 : index
    %c0_110 = arith.constant 0 : index
    %300 = vector.load %arg2[%c272, %c0_110] : memref<560x128xf32, #tpu.memory_space<vmem>>, vector<1x8xf32>
    %301 = vector.broadcast %300 : vector<1x8xf32> to vector<2x8xf32>
    %302 = arith.addf %299, %301 : vector<2x8xf32>
    %303 = arith.addf %283, %302 : vector<2x8xf32>
    %c280_111 = arith.constant 280 : index
    %c0_112 = arith.constant 0 : index
    %304 = vector.load %arg2[%c280_111, %c0_112] : memref<560x128xf32, #tpu.memory_space<vmem>>, vector<8x8xf32>
    %305 = arith.truncf %303 : vector<2x8xf32> to vector<2x8xbf16>
    %306 = arith.truncf %304 : vector<8x8xf32> to vector<8x8xbf16>
    %cst_113 = arith.constant dense<0.000000e+00> : vector<2x8xf32>
    %307 = tpu.matmul %305, %306, %cst_113 {dimension_numbers = #tpu.dot_dimension_numbers<[1], [0], [0], [1], [0, 0, 1, 1], [], []>} : vector<2x8xbf16>, vector<8x8xbf16>, vector<2x8xf32> -> vector<2x8xf32>
    %c288_114 = arith.constant 288 : index
    %c0_115 = arith.constant 0 : index
    %308 = vector.load %arg2[%c288_114, %c0_115] : memref<560x128xf32, #tpu.memory_space<vmem>>, vector<1x8xf32>
    %309 = vector.broadcast %308 : vector<1x8xf32> to vector<2x8xf32>
    %310 = arith.addf %307, %309 : vector<2x8xf32>
    %cst_116 = arith.constant 5.000000e-01 : f32
    %311 = vector.broadcast %cst_116 : f32 to vector<2x8xf32>
    %312 = arith.mulf %311, %310 : vector<2x8xf32>
    %313 = math.tanh %312 : vector<2x8xf32>
    %cst_117 = arith.constant 1.000000e+00 : f32
    %314 = vector.broadcast %cst_117 : f32 to vector<2x8xf32>
    %315 = arith.addf %313, %314 : vector<2x8xf32>
    %cst_118 = arith.constant 5.000000e-01 : f32
    %316 = vector.broadcast %cst_118 : f32 to vector<2x8xf32>
    %317 = arith.mulf %316, %315 : vector<2x8xf32>
    %318 = tpu.concatenate %160, %317 in 0 : vector<2x8xf32>, vector<2x8xf32> -> vector<4x8xf32>
    %c0_119 = arith.constant 0 : index
    %c0_120 = arith.constant 0 : index
    %319 = vector.load %arg3[%c0_119, %c0_120] : memref<4x8xf32, #tpu.memory_space<vmem>>, vector<4x8xf32>
    tpu.vector_store %arg3[%c0_119, %c0_120], %318 {strides = array<i32>} : memref<4x8xf32, #tpu.memory_space<vmem>>, vector<4x8xf32>,
    return
  }
  func.func @transform_0(%arg0: i32) -> (i32, i32) {
    %c0_i32 = arith.constant 0 : i32
    %c0_i32_0 = arith.constant 0 : i32
    %c0_i32_1 = arith.constant 0 : i32
    return %c0_i32, %c0_i32_0 : i32, i32
  }
  func.func @transform_1(%arg0: i32) -> (i32, i32) {
    %c0_i32 = arith.constant 0 : i32
    %c0_i32_0 = arith.constant 0 : i32
    %c0_i32_1 = arith.constant 0 : i32
    return %c0_i32, %c0_i32_0 : i32, i32
  }
  func.func @transform_2(%arg0: i32) -> (i32, i32) {
    %c0_i32 = arith.constant 0 : i32
    %c0_i32_0 = arith.constant 0 : i32
    %c0_i32_1 = arith.constant 0 : i32
    return %c0_i32, %c0_i32_0 : i32, i32
  }
}

</mosaic_0001>

<bundles_post_ra>
// kernel: forward.1
= control target key start
LH: loop header
LB: loop body
LE: loop exit
PB: predicated region body
PF: predicated region fallthrough
CT: control target
= control target key end

     0   :  { %7 = vsyncpa [#allocation3], 0  ;;  %s3385_s9 = smov [#allocation2]   ;;  %s4100_s0 = inlined_call_operand.vmem [shape: f32[32,8], index: 0, kind: input, shape index: {}]   ;;  %s4101_s1 = inlined_call_operand.hbm [shape: f32[560,128], index: 1, kind: input, shape index: {}]   ;;  %s4102_s2 = inlined_call_operand.vmem [shape: f32[4,8], index: 2, kind: output, shape index: {}]  }
   0x1   :  { %s15_s10 = sshll.u32 %s3385_s9, 4  ;;  %s3361_s13 = scalar_lea.hbm %s4101_s1, 8960  ;;  %s16_s10 = int_to_ptr.vmem [resolvable:$true] %s15_s10 }
   0x2   :  { %p3362_p0 = scmp.ne.s32.totalorder %s4101_s1, %s3361_s13  ;;  %p3365_p1 = scmp.lt.u32.totalorder %s3361_s13, %s4101_s1 }
   0x4   :  { %p3367_p2 = pnand %p3365_p1, %p3362_p0 }
   0x6   :  { %3370 = shalt.err (!%p3367_p2)
}
   0x7   :  { %s3371_s18 = scalar_lea.vmem %s16_s10, 8960  ;;  %p3376_p4 = scmp.lt.s32.totalorder %s16_s10, %s16_s10 }
   0x8   :  { %p3372_p3 = scmp.ne.s32.totalorder %s16_s10, %s3371_s18  ;;  %p3377_p5 = scmp.lt.s32.totalorder %s3371_s18, %s3371_s18 }
   0xa   :  { %p3378_p6 = por %p3377_p5, %p3376_p4 }
   0xc   :  { %p3379_p7 = pnand %p3378_p6, %p3372_p3 }
   0xe   :  { %3382 = shalt.err (!%p3379_p7)
}
   0xf   :  { %s3386_s19 = smov 128   ;;  %s3387_s20 = smov 8  }
  0x10   :  { %21 = dma.hbm_to_vmem [thread:$0]  %s4101_s1, 8960, %s16_s10, [#allocation3], %s3386_s19, %s3386_s19, %s3387_s20  }
  0x11   :  { %3383 = dma.done.wait [#allocation3], 8960  }
  0x12   :  { %3384 = vsyncadd [#allocation3], 4294958336  ;;  %v69_v0 = vld [vmem:[#allocation2] sm:$0xff]  ;;  %vm85_vm0 = vcmask 1043456   ;;  %v27_v2 = vld [vmem:[%s4100_s0 + $0x8] sm:$0xff]  ;;  %vm78_vm1 = vcmask 64512  }
  0x13   :  { %v26_v1 = vld [vmem:[%s4100_s0] sm:$0xff]  ;;  %v3426_v3 = vpack.c.bf16 %v69_v0, %v69_v0  ;;  %v28_v4 = vld [vmem:[%s4100_s0 + $0x10] sm:$0xf]  ;;  %v30_v5 = vld [vmem:[#allocation2 + $0x208] sm:$0xff]  ;;  %s3388_s1 = smov 120   ;;  %s3389_s29 = smov 112  }
  0x14   :  { %v31_v6 = vld [vmem:[#allocation2 + $0x210] sm:$0xff]  ;;  %v2685_v7 = vld [vmem:[#allocation2 + $0x220] ss:$0 sm:$0xff]  ;;  %v32_v8 = vld [vmem:[#allocation2 + $0x218] sm:$0xf]  ;;  %vm387_vm2 = vcmask 650240  }
  0x15   :  { %v3431_v9 = vld [vmem:[#allocation2 + $0x158] sm:$0xff]  ;;  %3157 = vmatprep.subr.msk.bf16.mxu0 %vm85_vm0, %v3426_v3  ;;  %v3437_v10 = vsel %vm85_vm0, %v3426_v3, 0  ;;  %v38_v11 = vmul.f32 %v2685_v7, %v26_v1  ;;  %v39_v12 = vmul.f32 %v2685_v7, %v27_v2  ;;  %v40_v13 = vmul.f32 %v2685_v7, %v28_v4  ;;  %v3441_v14 = vld [vmem:[#allocation2 + $0x148] sm:$0xff]  ;;  %v3446_v15 = vld [vmem:[#allocation2 + $0x160] sm:$0xff] }
  0x16   :  { %163 = vrot.lane.b32.xlu1 %v3431_v9, %s3387_s20  ;;  %2879 = vmatpush3.bf16.msra.mxu0 %v3437_v10  ;;  %v3454_v19 = vld [vmem:[#allocation2 + $0x150] sm:$0xff]  ;;  %v3467_v23 = vld [vmem:[#allocation2 + $0x168] sm:$0xff]  ;;  %v3474_v24 = vld [vmem:[#allocation2 + $0x180] sm:$0xff]  ;;  %vm380_vm3 = vcmask 654336   ;;  %vm480_vm4 = vcmask 1041408   ;;  %vm473_vm5 = vcmask 31744  }
  0x17   :  { %159 = vrot.lane.b32.xlu0 %v3441_v14, %s3387_s20  ;;  %v3448_v16 = vadd.f32 %v38_v11, %v30_v5  ;;  %v3450_v17 = vadd.f32 %v39_v12, %v31_v6  ;;  %v3452_v18 = vadd.f32 %v40_v13, %v32_v8  ;;  %v3464_v22 = vld [vmem:[#allocation2 + $0x170] sm:$0xff]  ;;  %v3476_v25 = vld [vmem:[#allocation2 + $0x178] sm:$0xff]  ;;  %v3484_v27 = vld [vmem:[#allocation2 + $0x188] sm:$0xff]  ;;  %vm3391_vm6 = vmmov 0  }
  0x18   :  { %v3482_v26 = vld [vmem:[#allocation2 + $0x190] sm:$0xff]  ;;  %v2686_v34 = vld [vmem:[#allocation2 + $0x8] ss:$0 sm:$0xff]  ;;  %v58_v12 = vld [vmem:[#allocation2 + $0x198] sm:$0xff]  ;;  %vm689_vm10 = vcmask 130048   ;;  %vm1059_vm11 = vcmask 648192  }
  0x19   :  { %v70_v20 = vpack.c.bf16 %v3450_v17, %v3448_v16  ;;  %v71_v21 = vpack.c.bf16 %v3452_v18, %v3452_v18  ;;  %v59_v13 = vld [vmem:[#allocation2 + $0x1a0] sm:$0xff]  ;;  %vm1390_vm13 = vcmask 15360  }
  0x1a   :  { %165 = vrot.lane.b32.xlu1 %v3446_v15, %s3387_s20 }
  0x1b   :  { %161 = vrot.lane.b32.xlu0 %v3454_v19, %s3387_s20  ;;  %2880 = vmatprep.mubr.msk.bf16.mxu0 %vm78_vm1, %v70_v20  ;;  %v3189_v20 = vpack.i.bf16 %v59_v13, %v58_v12 }
  0x1c   :  { %2881 = vmatmul.mubr.msk.bf16.vlgmr.msra.gmra.mrb[0].mxu0 %vm78_vm1, %v71_v21  ;;  %v60_v21 = vld [vmem:[#allocation2 + $0x1a8] sm:$0xff] }
  0x1e   :  { %169 = vrot.lane.b32.xlu1 %v3464_v22, %s3387_s20 }
  0x1f   :  { %167 = vrot.lane.b32.xlu0 %v3467_v23, %s3387_s20 }
  0x22   :  { %173 = vrot.lane.b32.xlu1 %v3474_v24, %s3387_s20 }
  0x23   :  { %171 = vrot.lane.b32.xlu0 %v3476_v25, %s3387_s20 }
  0x26   :  { %177 = vrot.lane.b32.xlu1 %v3482_v26, %s3387_s20 }
  0x27   :  { %175 = vrot.lane.b32.xlu0 %v3484_v27, %s3387_s20 }
  0x88   :  { %v3490_v28 = vpop.permute.xlu1 %163 }
  0x89   :  { %v3492_v29 = vpop.permute.xlu0 %159 }
  0x8c   :  { %v3494_v30 = vpop.permute.xlu1 %165 }
  0x8d   :  { %v3496_v31 = vpop.permute.xlu0 %161 }
  0x90   :  { %v3498_v32 = vpop.permute.xlu1 %169 }
  0x91   :  { %v3500_v33 = vpop.permute.xlu0 %167 }
  0x94   :  { %v3502_v36 = vpop.permute.xlu1 %173 }
  0x95   :  { %v3506_v39 = vpop.permute.xlu0 %171 }
  0x98   :  { %v3512_v48 = vpop.permute.xlu1 %177 }
  0x99   :  { %v3515_v52 = vpop.permute.xlu0 %175 }
  0xef   :  { %v2882_v35 = vpop.f32.mrb[0].mxu0 }
  0xf0   :  { %v3504_v37 = vadd.f32 %v2882_v35, %v2686_v34  ;;  %v123_v38 = vpop.f32.mrb[1].mxu0 }
  0xf1   :  { %v124_v40 = vadd.f32 %v2686_v34, %v123_v38  ;;  %v2883_v41 = vpop.f32.mrb[2].mxu0  ;;  %v62_v38 = vld [vmem:[#allocation2 + $0x1b8] sm:$0xff] }
  0xf2   :  { %v126_v42 = vpop.f32.mrb[3].mxu0  ;;  %v143_v45 = vrot.slane %v3504_v37, 4 }
  0xf3   :  { %v127_v43 = vadd.f32 %v2686_v34, %v126_v42  ;;  %v140_v44 = vrot.slane %v124_v40, 4  ;;  %v189_v53 = vmul.f32 %v3492_v29, %v124_v40  ;;  %v194_v58 = vmul.f32 %v3498_v32, %v124_v40  ;;  %v61_v34 = vld [vmem:[#allocation2 + $0x1b0] sm:$0xff]  ;;  %v64_v42 = vld [vmem:[#allocation2 + $0x1c8] sm:$0xff] }
  0xf4   :  { %v3199_v35 = vpack.i.bf16 %v61_v34, %v60_v21 }
  0xf5   :  { %v148_v46 = vsel %vm85_vm0, %v3504_v37, %v140_v44  ;;  %v195_v47 = vmul.f32 %v3506_v39, %v127_v43  ;;  %v141_v49 = vrot.slane %v127_v43, 4  ;;  %v289_v50 = vpack.c.bf16 %v127_v43, %v124_v40  ;;  %v63_v40 = vld [vmem:[#allocation2 + $0x1c0] sm:$0xff] }
  0xf6   :  { %v196_v51 = vmul.f32 %v3502_v36, %v148_v46  ;;  %v190_v54 = vmul.f32 %v3496_v31, %v127_v43  ;;  %v191_v55 = vmul.f32 %v3490_v28, %v148_v46  ;;  %v3209_v41 = vpack.i.bf16 %v63_v40, %v62_v38  ;;  %v65_v43 = vld [vmem:[#allocation2 + $0x1d0] sm:$0xff] }
  0xf7   :  { %v144_v56 = vsel %vm85_vm0, %v141_v49, %v143_v45  ;;  %v142_v57 = vsel %vm85_vm0, %v140_v44, %v141_v49  ;;  %2894 = vmatprep.mubr.msk.bf16.mxu1 %vm78_vm1, %v289_v50  ;;  %v3219_v44 = vpack.i.bf16 %v65_v43, %v64_v42 }
  0xf8   :  { %v3214_v59 = vpack.i.bf16 %v196_v51, %v195_v47  ;;  %v294_v60 = vpack.c.bf16 %v196_v51, %v195_v47  ;;  %v193_v61 = vmul.f32 %v3500_v33, %v144_v56  ;;  %v3526_v62 = vmul.f32 %v3512_v48, %v144_v56 }
  0xf9   :  { %v3529_v63 = vmul.f32 %v3515_v52, %v142_v57  ;;  %v192_v0 = vmul.f32 %v3494_v30, %v142_v57  ;;  %v291_v1 = vpack.c.bf16 %v190_v54, %v189_v53  ;;  %v3184_v2 = vpack.i.bf16 %v190_v54, %v189_v53 }
  0xfa   :  { %v293_v4 = vpack.c.bf16 %v194_v58, %v193_v61  ;;  %v3204_v5 = vpack.i.bf16 %v194_v58, %v193_v61 }
  0xfb   :  { %v3224_v6 = vpack.i.bf16 %v3526_v62, %v3529_v63  ;;  %v295_v7 = vpack.c.bf16 %v3526_v62, %v3529_v63  ;;  %301 = vrot.lane.b32.xlu0 %v291_v1, %s3388_s1  ;;  %v292_v8 = vpack.c.bf16 %v192_v0, %v191_v55  ;;  %v3194_v11 = vpack.i.bf16 %v192_v0, %v191_v55 }
  0xfd   :  { %303 = vrot.lane.b32.xlu1 %v292_v8, %s3388_s1 }
  0xff   :  { %305 = vrot.lane.b32.xlu0 %v293_v4, %s3388_s1 }
 0x101   :  { %307 = vrot.lane.b32.xlu1 %v294_v60, %s3388_s1 }
 0x103   :  { %309 = vrot.lane.b32.xlu0 %v295_v7, %s3388_s1 }
 0x105   :  { %3185 = vrot.lane.b32.xlu1 %v3184_v2, %s3389_s29 }
 0x107   :  { %3190 = vrot.lane.b32.xlu0 %v3189_v20, %s3387_s20 }
 0x109   :  { %3195 = vrot.lane.b32.xlu1 %v3194_v11, %s3389_s29 }
 0x10b   :  { %3205 = vrot.lane.b32.xlu0 %v3204_v5, %s3389_s29 }
 0x10d   :  { %3200 = vrot.lane.b32.xlu1 %v3199_v35, %s3387_s20 }
 0x10f   :  { %3215 = vrot.lane.b32.xlu0 %v3214_v59, %s3389_s29 }
 0x111   :  { %3210 = vrot.lane.b32.xlu1 %v3209_v41, %s3387_s20 }
 0x115   :  { %3220 = vrot.lane.b32.xlu1 %v3219_v44, %s3387_s20 }
 0x16d   :  { %v302_v45 = vpop.permute.xlu0 %301 }
 0x16e   :  { %3158 = vmatprep.subr.msk.bf16.mxu1 %vm78_vm1, %v302_v45  ;;  %v318_v46 = vsel %vm78_vm1, %v302_v45, 0 }
 0x16f   :  { %2885 = vmatpush3.bf16.xpose.msra.mxu1 %v318_v46  ;;  %v304_v47 = vpop.permute.xlu1 %303 }
 0x170   :  { %3159 = vmatprep.subr.msk.bf16.mxu1 %vm78_vm1, %v304_v47  ;;  %v321_v53 = vsel %vm78_vm1, %v304_v47, 0 }
 0x171   :  { %v306_v49 = vpop.permute.xlu0 %305 }
 0x172   :  { %v324_v2 = vsel %vm78_vm1, %v306_v49, 0 }
 0x173   :  { %v308_v50 = vpop.permute.xlu1 %307 }
 0x174   :  { %v327_v43 = vsel %vm78_vm1, %v308_v50, 0 }
 0x175   :  { %v310_v51 = vpop.permute.xlu0 %309 }
 0x177   :  { %2887 = vmatpush3.bf16.xpose.msra.mxu1 %v321_v53  ;;  %v3186_v54 = vpop.permute.xlu1 %3185 }
 0x178   :  { %3160 = vmatprep.subr.msk.bf16.mxu1 %vm78_vm1, %v306_v49  ;;  %v3188_v55 = vunpack.i.h.bf16 %v3186_v54  ;;  %v3187_v56 = vunpack.i.l.bf16 %v3186_v54 }
 0x179   :  { %v3191_v57 = vpop.permute.xlu0 %3190 }
 0x17a   :  { %v3554_v58 = vunpack.i.h.bf16 %v3191_v57  ;;  %v3556_v59 = vunpack.i.l.bf16 %v3191_v57 }
 0x17b   :  { %v3196_v60 = vpop.permute.xlu1 %3195 }
 0x17c   :  { %v279_v61 = vsel %vm78_vm1, %v3187_v56, %v3556_v59  ;;  %v280_v0 = vsel %vm78_vm1, %v3188_v55, %v3554_v58  ;;  %v3198_v7 = vunpack.i.h.bf16 %v3196_v60  ;;  %v3197_v8 = vunpack.i.l.bf16 %v3196_v60 }
 0x17d   :  { %v402_v1 = vpack.c.bf16 %v280_v0, %v279_v61  ;;  %v3206_v4 = vpop.permute.xlu0 %3205  ;;  %v330_v60 = vsel %vm78_vm1, %v310_v51, 0  ;;  %v290_v61 = vpack.c.bf16 %v3504_v37, %v3504_v37  ;;  %v3594_v0 = vld [vmem:[#allocation2 + $0x138] sm:$0xf] }
 0x17e   :  { %v3208_v35 = vunpack.i.h.bf16 %v3206_v4  ;;  %v3207_v38 = vunpack.i.l.bf16 %v3206_v4 }
 0x17f   :  { %2889 = vmatpush3.bf16.xpose.msra.mxu1 %v324_v2  ;;  %2898 = vmatprep.subr.bf16.mxu0 %v402_v1  ;;  %v3201_v5 = vpop.permute.xlu1 %3200 }
 0x180   :  { %3161 = vmatprep.subr.msk.bf16.mxu1 %vm78_vm1, %v308_v50  ;;  %v3564_v11 = vunpack.i.h.bf16 %v3201_v5  ;;  %v3566_v12 = vunpack.i.l.bf16 %v3201_v5  ;;  %2899 = vmatpush3.bf16.msra.mxu0 %v402_v1  ;;  %v3596_v1 = vld [vmem:[#allocation2 + $0x128] sm:$0xff] }
 0x181   :  { %v3216_v42 = vpop.permute.xlu0 %3215 }
 0x182   :  { %v281_v13 = vsel %vm78_vm1, %v3197_v8, %v3566_v12  ;;  %v282_v20 = vsel %vm78_vm1, %v3198_v7, %v3564_v11  ;;  %v3218_v49 = vunpack.i.h.bf16 %v3216_v42  ;;  %v3217_v53 = vunpack.i.l.bf16 %v3216_v42  ;;  %v3599_v7 = vld [vmem:[#allocation2 + $0x130] sm:$0xff] }
 0x183   :  { %v3211_v21 = vpop.permute.xlu1 %3210  ;;  %v403_v34 = vpack.c.bf16 %v282_v20, %v281_v13 }
 0x184   :  { %v3572_v40 = vunpack.i.h.bf16 %v3211_v21  ;;  %v3574_v41 = vunpack.i.l.bf16 %v3211_v21 }
 0x185   :  { %2900 = vmatprep.subr.bf16.mxu0 %v403_v34 }
 0x186   :  { %2901 = vmatpush3.bf16.msra.mxu0 %v403_v34  ;;  %v283_v44 = vsel %vm78_vm1, %v3207_v38, %v3574_v41  ;;  %v284_v45 = vsel %vm78_vm1, %v3208_v35, %v3572_v40  ;;  %v66_v35 = vld [vmem:[#allocation2 + $0x1d8] sm:$0xff]  ;;  %v67_v38 = vld [vmem:[#allocation2 + $0x1e0] sm:$0xff] }
 0x187   :  { %2891 = vmatpush3.bf16.xpose.msra.mxu1 %v327_v43  ;;  %v3221_v46 = vpop.permute.xlu1 %3220  ;;  %v404_v47 = vpack.c.bf16 %v284_v45, %v283_v44  ;;  %v3229_v42 = vpack.i.bf16 %v67_v38, %v66_v35 }
 0x188   :  { %3162 = vmatprep.subr.msk.bf16.mxu1 %vm78_vm1, %v310_v51  ;;  %v3582_v54 = vunpack.i.h.bf16 %v3221_v46  ;;  %v3584_v55 = vunpack.i.l.bf16 %v3221_v46 }
 0x189   :  { %2902 = vmatprep.subr.bf16.mxu0 %v404_v47 }
 0x18a   :  { %2903 = vmatpush3.bf16.msra.mxu0 %v404_v47  ;;  %v285_v50 = vsel %vm78_vm1, %v3217_v53, %v3584_v55  ;;  %v286_v56 = vsel %vm78_vm1, %v3218_v49, %v3582_v54 }
 0x18b   :  { %v405_v57 = vpack.c.bf16 %v286_v56, %v285_v50 }
 0x18d   :  { %2904 = vmatprep.subr.bf16.mxu0 %v405_v57 }
 0x18e   :  { %2905 = vmatpush3.bf16.msra.mxu0 %v405_v57 }
 0x18f   :  { %2893 = vmatpush3.bf16.xpose.msra.mxu1 %v330_v60 }
 0x196   :  { %2895 = vmatmul.mubr.msk.bf16.vlgmr.msra.gmra.mrb[0].mxu1 %vm78_vm1, %v290_v61 }
 0x269   :  { %v2896_v2 = vpop.f32.mrb[0].mxu1 }
 0x26a   :  { %v375_v4 = vadd.f32 %v2896_v2, %v3594_v0  ;;  %v366_v5 = vpop.f32.mrb[1].mxu1 }
 0x26b   :  { %v367_v51 = vadd.f32 %v366_v5, %v3596_v1  ;;  %v2897_v8 = vpop.f32.mrb[2].mxu1 }
 0x26c   :  { %v369_v13 = vpop.f32.mrb[3].mxu1  ;;  %v388_v37 = vsel %vm387_vm2, %v375_v4, -inf }
 0x26d   :  { %v370_v20 = vadd.f32 %v369_v13, %v3599_v7  ;;  %389 = vmax.xlane.f32.xlu0 %v388_v37  ;;  %v381_v21 = vsel %vm380_vm3, %v367_v51, -inf }
 0x26e   :  { %382 = vmax.xlane.f32.xlu1 %v381_v21  ;;  %v68_v21 = vld [vmem:[#allocation2 + $0x1e8] sm:$0xf] }
 0x26f   :  { %v384_v34 = vsel %vm380_vm3, %v370_v20, -inf }
 0x271   :  { %385 = vmax.xlane.f32.xlu0 %v384_v34  ;;  %v3621_v34 = vpack.c.bf16 %v68_v21, %v68_v21  ;;  %v604_v21 = vld [vmem:[#allocation2 + $0x20] sm:$0xff] }
 0x27f   :  { %3230 = vrot.lane.b32.xlu1 %v3229_v42, %s3387_s20  ;;  %v3627_v42 = vsel %vm480_vm4, %v3621_v34, 0 }
 0x287   :  { %3225 = vrot.lane.b32.xlu0 %v3224_v6, %s3389_s29 }
 0x2fa   :  { %v390_v43 = vpop.xlane.xlu0 %389 }
 0x2fb   :  { %v393_v44 = vsub.f32 %v375_v4, %v390_v43  ;;  %v383_v45 = vpop.xlane.xlu1 %382 }
 0x2fc   :  { %v391_v46 = vsub.f32 %v367_v51, %v383_v45 }
 0x2fd   :  { %v398_v47 = vmul.f32 1.442695, %v393_v44 }
 0x2fe   :  { %v394_v49 = vmul.f32 1.442695, %v391_v46  ;;  %v386_v53 = vpop.xlane.xlu0 %385 }
 0x2ff   :  { %v392_v50 = vsub.f32 %v370_v20, %v386_v53  ;;  %v3231_v56 = vpop.permute.xlu1 %3230  ;;  %3309 = vpow2.f32 %v398_v47 }
 0x300   :  { %v3611_v60 = vunpack.i.h.bf16 %v3231_v56  ;;  %v3613_v61 = vunpack.i.l.bf16 %v3231_v56  ;;  %3311 = vpow2.f32 %v394_v49 }
 0x301   :  { %v396_v57 = vmul.f32 1.442695, %v392_v50 }
 0x302   :  { %v3226_v2 = vpop.permute.xlu0 %3225 }
 0x303   :  { %3313 = vpow2.f32 %v396_v57  ;;  %v3228_v62 = vunpack.i.h.bf16 %v3226_v2  ;;  %v3227_v63 = vunpack.i.l.bf16 %v3226_v2  ;;  %v535_v57 = vld [vmem:[#allocation2 + $0x10] sm:$0xff] }
 0x304   :  { %v3634_v2 = vpack.c.bf16 %v535_v57, %v535_v57 }
 0x305   :  { %v287_v6 = vsel %vm78_vm1, %v3227_v63, %v3613_v61  ;;  %v288_v4 = vsel %vm78_vm1, %v3228_v62, %v3611_v60 }
 0x306   :  { %v406_v5 = vpack.c.bf16 %v288_v4, %v287_v6  ;;  %v3640_v62 = vsel %vm85_vm0, %v3634_v2, 0 }
 0x307   :  { %4115 = vst [vmem:[#allocation5_spill] sm:$0xff] %v3640_v62 }
 0x308   :  { %2906 = vmatprep.subr.bf16.mxu0 %v406_v5 }
 0x309   :  { %2907 = vmatpush3.bf16.msra.mxu0 %v406_v5  ;;  %v3310_v51 = vpop.eup %3309 }
 0x30a   :  { %v3312_v8 = vpop.eup %3311  ;;  %v401_v20 = vpack.c.bf16 %v3310_v51, %v3310_v51  ;;  %3163 = vmatprep.subr.msk.bf16.mxu0 %vm480_vm4, %v3621_v34 }
 0x30d   :  { %v3314_v13 = vpop.eup %3313 }
 0x30e   :  { %v400_v37 = vpack.c.bf16 %v3314_v13, %v3312_v8 }
 0x310   :  { %2908 = vmatprep.mubr.msk.bf16.mxu0 %vm380_vm3, %v400_v37 }
 0x311   :  { %2909 = vmatmul.mubr.msk.bf16.vlgmr.msra.gmra.mrb[4].mxu0 %vm380_vm3, %v401_v20 }
 0x312   :  { %2913 = vmatpush3.bf16.msra.mxu0 %v3627_v42 }
 0x313   :  { %3164 = vmatprep.subr.msk.bf16.mxu0 %vm85_vm0, %v3634_v2 }
 0x3e4   :  { %v2910_v35 = vpop.f32.mrb[4].mxu0 }
 0x3e5   :  { %3315 = vrcp.f32 %v2910_v35  ;;  %v447_v38 = vpop.f32.mrb[5].mxu0 }
 0x3e6   :  { %v2911_v43 = vpop.f32.mrb[6].mxu0  ;;  %3317 = vrcp.f32 %v447_v38 }
 0x3e7   :  { %v450_v44 = vpop.f32.mrb[7].mxu0  ;;  %v3645_v43 = vpack.c.bf16 %v604_v21, %v604_v21 }
 0x3e8   :  { %3319 = vrcp.f32 %v450_v44 }
 0x3ef   :  { %v3316_v45 = vpop.eup %3315 }
 0x3f0   :  { %v465_v46 = vpack.c.bf16 %v3316_v45, %v3316_v45  ;;  %v3318_v47 = vpop.eup %3317 }
 0x3f2   :  { %v3320_v49 = vpop.eup %3319  ;;  %471 = vrot.lane.b32.xlu1 %v465_v46, %s3388_s1 }
 0x3f3   :  { %v464_v53 = vpack.c.bf16 %v3320_v49, %v3318_v47 }
 0x3f5   :  { %469 = vrot.lane.b32.xlu0 %v464_v53, %s3388_s1 }
 0x464   :  { %v472_v56 = vpop.permute.xlu1 %471 }
 0x467   :  { %v470_v50 = vpop.permute.xlu0 %469 }
 0x468   :  { %2914 = vmatprep.mubr.msk.bf16.mxu0 %vm473_vm5, %v470_v50 }
 0x469   :  { %2915 = vmatmul.mubr.msk.bf16.vlgmr.msra.gmra.mrb[8].mxu0 %vm473_vm5, %v472_v56 }
 0x46a   :  { %2919 = vmatpush3.bf16.msra.mxu0 %v3640_v62 }
 0x46b   :  { %3165 = vmatprep.subr.msk.bf16.mxu0 %vm85_vm0, %v3645_v43 }
 0x53c   :  { %v2916_v63 = vpop.f32.mrb[8].mxu0 }
 0x53d   :  { %v534_v6 = vmul.f32 %v2916_v63, %v2910_v35  ;;  %v518_v4 = vpop.f32.mrb[9].mxu0  ;;  %v3651_v35 = vsel %vm85_vm0, %v3645_v43, 0 }
 0x53e   :  { %v532_v5 = vmul.f32 %v518_v4, %v447_v38  ;;  %v2917_v51 = vpop.f32.mrb[10].mxu0  ;;  %v3654_v38 = vld [vmem:[#allocation2 + $0x18] ss:$0 sm:$0xff] }
 0x53f   :  { %v521_v8 = vpop.f32.mrb[11].mxu0  ;;  %v537_v20 = vpack.c.bf16 %v534_v6, %v534_v6  ;;  %4116 = vst [vmem:[#allocation6_spill] sm:$0xff] %v3654_v38  ;;  %v680_v51 = vld [vmem:[#allocation2 + $0x38] sm:$0xff] }
 0x540   :  { %v533_v13 = vmul.f32 %v521_v8, %v450_v44 }
 0x542   :  { %v536_v37 = vpack.c.bf16 %v533_v13, %v532_v5  ;;  %v679_v5 = vld [vmem:[#allocation2 + $0x30] sm:$0xff]  ;;  %v747_v13 = vld [vmem:[#allocation2 + $0x48] sm:$0xff] }
 0x543   :  { %v3674_v8 = vpack.c.bf16 %v680_v51, %v679_v5  ;;  %v749_v21 = vpack.c.bf16 %v747_v13, %v747_v13 }
 0x544   :  { %2920 = vmatprep.mubr.msk.bf16.mxu0 %vm78_vm1, %v536_v37  ;;  %v29_v37 = vld [vmem:[%s4100_s0 + $0x18] sm:$0x3] }
 0x545   :  { %2921 = vmatmul.mubr.msk.bf16.vlgmr.msra.gmra.mrb[12].mxu0 %vm78_vm1, %v537_v20  ;;  %4117 = vst [vmem:[#allocation7_spill] sm:$0xff] %v3674_v8  ;;  %2930 = vmatprep.subr.bf16.mxu1 %v3674_v8  ;;  %v4103_v20 = vmov 0.0  }
 0x546   :  { %2925 = vmatpush3.bf16.msra.mxu0 %v3651_v35  ;;  %2931 = vmatpush3.bf16.msra.mxu1 %v3674_v8 }
 0x547   :  { %2936 = vmatprep.subr.bf16.mxu0 %v4103_v20  ;;  %2942 = vmatprep.subr.bf16.mxu1 %v4103_v20 }
 0x618   :  { %v2922_v44 = vpop.f32.mrb[12].mxu0 }
 0x619   :  { %v596_v45 = vadd.f32 %v2922_v44, %v3654_v38  ;;  %v587_v46 = vpop.f32.mrb[13].mxu0  ;;  %v754_v44 = vsel %vm85_vm0, %v749_v21, 0 }
 0x61a   :  { %v588_v47 = vadd.f32 %v3654_v38, %v587_v46  ;;  %v2923_v49 = vpop.f32.mrb[14].mxu0  ;;  %v3690_v46 = vld [vmem:[#allocation2 + $0x28] ss:$0 sm:$0xff] }
 0x61b   :  { %v590_v53 = vpop.f32.mrb[15].mxu0  ;;  %v3660_v56 = vadd.f32 %v596_v45, %v3452_v18  ;;  %v3686_v45 = vpack.c.bf16 %v29_v37, %v29_v37  ;;  %4119 = vst [vmem:[#allocation9_spill] sm:$0xff] %v3690_v46 }
 0x61c   :  { %v591_v50 = vadd.f32 %v3654_v38, %v590_v53  ;;  %v3663_v57 = vadd.f32 %v588_v47, %v3448_v16 }
 0x61d   :  { %v606_v4 = vpack.c.bf16 %v3660_v56, %v3660_v56  ;;  %4118 = vst [vmem:[#allocation8_spill] sm:$0xff] %v3686_v45 }
 0x61e   :  { %v3666_v63 = vadd.f32 %v591_v50, %v3450_v17 }
 0x620   :  { %v605_v6 = vpack.c.bf16 %v3666_v63, %v3663_v57 }
 0x622   :  { %2926 = vmatprep.mubr.msk.bf16.mxu0 %vm78_vm1, %v605_v6 }
 0x623   :  { %2927 = vmatmul.mubr.msk.bf16.vlgmr.msra.gmra.mrb[16].mxu0 %vm78_vm1, %v606_v4 }
 0x624   :  { %2938 = vmatprep.mubr.msk.bf16.mxu0 %vm3391_vm6, %v4103_v20  ;;  %2937 = vmatpush3.bf16.msra.mxu0 %v754_v44 }
 0x62b   :  { %2939 = vmatmul.mubr.msk.bf16.vlgmr.msra.gmra.mrb[20].mxu0 %vm78_vm1, %v3686_v45 }
 0x6f6   :  { %v2928_v47 = vpop.f32.mrb[16].mxu0 }
 0x6f7   :  { %v665_v49 = vadd.f32 %v2928_v47, %v3690_v46  ;;  %v656_v53 = vpop.f32.mrb[17].mxu0  ;;  %v4120_v47 = vmov 0.0  }
 0x6f8   :  { %v657_v50 = vadd.f32 %v3690_v46, %v656_v53  ;;  %v2929_v6 = vpop.f32.mrb[18].mxu0  ;;  %v857_v53 = vld [vmem:[#allocation2 + $0x68] sm:$0xff] }
 0x6f9   :  { %v675_v4 = vmul.f32 0.01, %v665_v49  ;;  %v659_v5 = vpop.f32.mrb[19].mxu0  ;;  %vm672_vm7 = vcmp.ge.f32.partialorder %v665_v49, 0.0  ;;  %v860_v6 = vpack.c.bf16 %v857_v53, %v857_v53 }
 0x6fa   :  { %v673_v51 = vmul.f32 0.01, %v657_v50  ;;  %v660_v13 = vadd.f32 %v3690_v46, %v659_v5  ;;  %vm670_vm8 = vcmp.ge.f32.partialorder %v657_v50, 0.0 }
 0x6fb   :  { %v678_v44 = vsel %vm672_vm7, %v665_v49, %v675_v4  ;;  %3166 = vmatprep.subr.msk.bf16.mxu0 %vm85_vm0, %v860_v6  ;;  %v873_v5 = vsel %vm85_vm0, %v860_v6, 0 }
 0x6fc   :  { %vm671_vm9 = vcmp.ge.f32.partialorder %v660_v13, 0.0  ;;  %v674_v21 = vmul.f32 0.01, %v660_v13  ;;  %v676_v20 = vsel %vm670_vm8, %v657_v50, %v673_v51  ;;  %v682_v8 = vpack.c.bf16 %v678_v44, %v678_v44  ;;  %2949 = vmatpush3.bf16.msra.mxu0 %v873_v5  ;;  %v2705_v50 = vld [vmem:[#allocation2 + $0x50] ss:$0 sm:$0xff] }
 0x6fd   :  { %2968 = vmatprep.subr.bf16.mxu0 %v4120_v47 }
 0x6fe   :  { %v677_v45 = vsel %vm671_vm9, %v660_v13, %v674_v21  ;;  %v790_v49 = vpop.f32.mrb[20].mxu0 }
 0x6ff   :  { %v681_v38 = vpack.c.bf16 %v677_v45, %v676_v20  ;;  %v803_v20 = vld [vmem:[#allocation2 + $0x58] sm:$0xff]  ;;  %v796_v45 = vadd.f32 %v790_v49, %v29_v37  ;;  %v2940_v4 = vpop.f32.mrb[21].mxu0  ;;  %v3711_v37 = vld [vmem:[#allocation2 + $0x40] ss:$0 sm:$0xff] }
 0x700   :  { %v793_v51 = vpop.f32.mrb[22].mxu0  ;;  %4121 = vst [vmem:[#allocation10_spill] sm:$0xff] %v3711_v37 }
 0x701   :  { %2932 = vmatprep.mubr.msk.bf16.mxu1 %vm689_vm10, %v681_v38  ;;  %v805_v38 = vpack.c.bf16 %v803_v20, %v803_v20  ;;  %v2941_v13 = vpop.f32.mrb[23].mxu0 }
 0x702   :  { %2933 = vmatmul.mubr.msk.bf16.vlgmr.msra.gmra.mrb[4].mxu1 %vm689_vm10, %v682_v8  ;;  %v3702_v8 = vadd.f32 %v2705_v50, %v796_v45 }
 0x703   :  { %2944 = vmatprep.mubr.msk.bf16.mxu1 %vm3391_vm6, %v4120_v47  ;;  %v815_v21 = vsel %vm85_vm0, %v805_v38, 0 }
 0x704   :  { %2943 = vmatpush3.bf16.msra.mxu1 %v815_v21  ;;  %v804_v44 = vpack.c.bf16 %v3702_v8, %v3702_v8 }
 0x705   :  { %2954 = vmatprep.subr.bf16.mxu1 %v4120_v47 }
 0x70a   :  { %2945 = vmatmul.mubr.msk.bf16.vlgmr.msra.gmra.mrb[8].mxu1 %vm78_vm1, %v804_v44 }
 0x70b   :  { %2964 = vmatprep.mubr.msk.bf16.mxu1 %vm3391_vm6, %v4120_v47 }
 0x7d5   :  { %v2934_v53 = vpop.f32.mrb[4].mxu1 }
 0x7d6   :  { %v739_v6 = vadd.f32 %v2934_v53, %v3711_v37  ;;  %v730_v5 = vpop.f32.mrb[5].mxu1 }
 0x7d7   :  { %v731_v49 = vadd.f32 %v3711_v37, %v730_v5  ;;  %v2935_v50 = vpop.f32.mrb[6].mxu1 }
 0x7d8   :  { %v733_v20 = vpop.f32.mrb[7].mxu1  ;;  %v746_v4 = vadd.f32 %v739_v6, %v3660_v56 }
 0x7d9   :  { %v734_v45 = vadd.f32 %v3711_v37, %v733_v20  ;;  %v744_v38 = vadd.f32 %v731_v49, %v3663_v57  ;;  %v2708_v20 = vld [vmem:[#allocation2 + $0x70] ss:$0 sm:$0xff] }
 0x7da   :  { %v859_v21 = vpack.c.bf16 %v746_v4, %v746_v4 }
 0x7db   :  { %v745_v51 = vadd.f32 %v734_v45, %v3666_v63 }
 0x7dd   :  { %v858_v13 = vpack.c.bf16 %v745_v51, %v744_v38  ;;  %v851_v44 = vpop.f32.mrb[8].mxu1 }
 0x7de   :  { %v2946_v53 = vpop.f32.mrb[9].mxu1 }
 0x7df   :  { %2950 = vmatprep.mubr.msk.bf16.mxu0 %vm78_vm1, %v858_v13  ;;  %v854_v5 = vpop.f32.mrb[10].mxu1 }
 0x7e0   :  { %2951 = vmatmul.mubr.msk.bf16.vlgmr.msra.gmra.mrb[24].mxu0 %vm78_vm1, %v859_v21  ;;  %v2947_v50 = vpop.f32.mrb[11].mxu1 }
 0x7e1   :  { %2978 = vmatprep.mubr.msk.bf16.mxu0 %vm3391_vm6, %v4120_v47 }
 0x8b3   :  { %v2952_v37 = vpop.f32.mrb[24].mxu0 }
 0x8b4   :  { %v918_v56 = vadd.f32 %v2952_v37, %v2708_v20  ;;  %v909_v6 = vpop.f32.mrb[25].mxu0 }
 0x8b5   :  { %v910_v57 = vadd.f32 %v2708_v20, %v909_v6  ;;  %v2953_v49 = vpop.f32.mrb[26].mxu0 }
 0x8b6   :  { %v912_v63 = vpop.f32.mrb[27].mxu0  ;;  %v929_v38 = vrot.slane %v918_v56, 4 }
 0x8b7   :  { %v926_v45 = vrot.slane %v910_v57, 4  ;;  %v913_v4 = vadd.f32 %v2708_v20, %v912_v63  ;;  %v935_v51 = vmul.f32 %v910_v57, %v3441_v14  ;;  %v940_v5 = vmul.f32 %v910_v57, %v3464_v22 }
 0x8b9   :  { %v927_v13 = vrot.slane %v913_v4, 4  ;;  %v936_v21 = vmul.f32 %v913_v4, %v3454_v19  ;;  %v941_v46 = vmul.f32 %v913_v4, %v3476_v25  ;;  %v934_v53 = vsel %vm85_vm0, %v918_v56, %v926_v45 }
 0x8ba   :  { %v937_v37 = vmul.f32 %v934_v53, %v3431_v9  ;;  %v942_v50 = vmul.f32 %v934_v53, %v3474_v24 }
 0x8bb   :  { %v3234_v6 = vpack.i.bf16 %v936_v21, %v935_v51  ;;  %v996_v49 = vpack.c.bf16 %v936_v21, %v935_v51  ;;  %v928_v20 = vsel %vm85_vm0, %v926_v45, %v927_v13  ;;  %v930_v63 = vsel %vm85_vm0, %v927_v13, %v929_v38 }
 0x8bc   :  { %v938_v14 = vmul.f32 %v928_v20, %v3446_v15  ;;  %v939_v19 = vmul.f32 %v930_v63, %v3467_v23  ;;  %v3249_v62 = vpack.i.bf16 %v942_v50, %v941_v46  ;;  %v943_v25 = vmul.f32 %v928_v20, %v3484_v27 }
 0x8bd   :  { %3235 = vrot.lane.b32.xlu1 %v3234_v6, %s3388_s1  ;;  %v1005_v22 = vsel %vm78_vm1, %v996_v49, 0  ;;  %v944_v9 = vmul.f32 %v930_v63, %v3482_v26  ;;  %v999_v24 = vpack.c.bf16 %v942_v50, %v941_v46  ;;  %v2706_v46 = vld [vmem:[#allocation2 + $0x60] ss:$0 sm:$0xff] }
 0x8be   :  { %2955 = vmatpush3.bf16.xpose.msra.mxu1 %v1005_v22  ;;  %v3239_v56 = vpack.i.bf16 %v938_v14, %v937_v37  ;;  %v3244_v57 = vpack.i.bf16 %v940_v5, %v939_v19  ;;  %v997_v45 = vpack.c.bf16 %v938_v14, %v937_v37  ;;  %v998_v4 = vpack.c.bf16 %v940_v5, %v939_v19 }
 0x8bf   :  { %2956 = vmatprep.subr.bf16.mxu1 %v4120_v47  ;;  %v3254_v15 = vpack.i.bf16 %v944_v9, %v943_v25  ;;  %v1000_v38 = vpack.c.bf16 %v944_v9, %v943_v25  ;;  %v1014_v27 = vsel %vm78_vm1, %v999_v24, 0  ;;  %v852_v51 = vadd.f32 %v2706_v46, %v851_v44 }
 0x8c0   :  { %v1008_v23 = vsel %vm78_vm1, %v997_v45, 0  ;;  %v1011_v26 = vsel %vm78_vm1, %v998_v4, 0 }
 0x8c1   :  { %3240 = vrot.lane.b32.xlu1 %v3239_v56, %s3388_s1  ;;  %v1017_v13 = vsel %vm78_vm1, %v1000_v38, 0 }
 0x8c5   :  { %3245 = vrot.lane.b32.xlu1 %v3244_v57, %s3388_s1 }
 0x8c6   :  { %2957 = vmatpush3.bf16.xpose.msra.mxu1 %v1008_v23 }
 0x8c7   :  { %2958 = vmatprep.subr.bf16.mxu1 %v4120_v47 }
 0x8c9   :  { %3250 = vrot.lane.b32.xlu1 %v3249_v62, %s3388_s1  ;;  %v995_v62 = vpack.c.bf16 %v852_v51, %v852_v51 }
 0x8cd   :  { %3255 = vrot.lane.b32.xlu1 %v3254_v15, %s3388_s1 }
 0x8ce   :  { %2959 = vmatpush3.bf16.xpose.msra.mxu1 %v1011_v26 }
 0x8cf   :  { %2960 = vmatprep.subr.bf16.mxu1 %v4120_v47 }
 0x8d6   :  { %2961 = vmatpush3.bf16.xpose.msra.mxu1 %v1014_v27 }
 0x8d7   :  { %2962 = vmatprep.subr.bf16.mxu1 %v4120_v47 }
 0x8de   :  { %2963 = vmatpush3.bf16.xpose.msra.mxu1 %v1017_v13 }
 0x8df   :  { %2994 = vmatprep.subr.bf16.mxu1 %v4120_v47 }
 0x8e5   :  { %2965 = vmatmul.mubr.msk.bf16.vlgmr.msra.gmra.mrb[12].mxu1 %vm78_vm1, %v995_v62 }
 0x8e6   :  { %2996 = vmatprep.mubr.msk.bf16.mxu1 %vm3391_vm6, %v4120_v47 }
 0x92f   :  { %v3236_v21 = vpop.permute.xlu1 %3235 }
 0x930   :  { %v3238_v53 = vunpack.i.h.bf16 %v3236_v21  ;;  %v3237_v5 = vunpack.i.l.bf16 %v3236_v21 }
 0x932   :  { %v986_v37 = vsel %vm78_vm1, %v3238_v53, %v3554_v58  ;;  %v985_v44 = vsel %vm78_vm1, %v3237_v5, %v3556_v59  ;;  %v3779_v53 = vld [vmem:[#allocation2 + $0x140] sm:$0x3] }
 0x933   :  { %v1067_v50 = vpack.c.bf16 %v986_v37, %v985_v44  ;;  %v3241_v6 = vpop.permute.xlu1 %3240 }
 0x934   :  { %v3243_v49 = vunpack.i.h.bf16 %v3241_v6  ;;  %v3242_v20 = vunpack.i.l.bf16 %v3241_v6 }
 0x935   :  { %2969 = vmatpush3.bf16.msra.mxu0 %v1067_v50 }
 0x936   :  { %v988_v63 = vsel %vm78_vm1, %v3243_v49, %v3564_v11  ;;  %v987_v14 = vsel %vm78_vm1, %v3242_v20, %v3566_v12  ;;  %2970 = vmatprep.subr.bf16.mxu0 %v4120_v47 }
 0x937   :  { %v1068_v19 = vpack.c.bf16 %v988_v63, %v987_v14  ;;  %v3246_v25 = vpop.permute.xlu1 %3245 }
 0x938   :  { %v3248_v22 = vunpack.i.h.bf16 %v3246_v25  ;;  %v3247_v9 = vunpack.i.l.bf16 %v3246_v25 }
 0x939   :  { %2971 = vmatpush3.bf16.msra.mxu0 %v1068_v19 }
 0x93a   :  { %v990_v24 = vsel %vm78_vm1, %v3248_v22, %v3572_v40  ;;  %v989_v56 = vsel %vm78_vm1, %v3247_v9, %v3574_v41  ;;  %2972 = vmatprep.subr.bf16.mxu0 %v4120_v47 }
 0x93b   :  { %v1069_v57 = vpack.c.bf16 %v990_v24, %v989_v56  ;;  %v3251_v45 = vpop.permute.xlu1 %3250 }
 0x93c   :  { %v3253_v4 = vunpack.i.h.bf16 %v3251_v45  ;;  %v3252_v15 = vunpack.i.l.bf16 %v3251_v45 }
 0x93d   :  { %2973 = vmatpush3.bf16.msra.mxu0 %v1069_v57 }
 0x93e   :  { %v992_v38 = vsel %vm78_vm1, %v3253_v4, %v3582_v54  ;;  %v991_v23 = vsel %vm78_vm1, %v3252_v15, %v3584_v55  ;;  %2974 = vmatprep.subr.bf16.mxu0 %v4120_v47  ;;  %v1164_v15 = vld [vmem:[#allocation2 + $0x78] sm:$0xff] }
 0x93f   :  { %v1070_v26 = vpack.c.bf16 %v992_v38, %v991_v23  ;;  %v3256_v27 = vpop.permute.xlu1 %3255  ;;  %v1166_v38 = vpack.c.bf16 %v1164_v15, %v1164_v15 }
 0x940   :  { %v3258_v46 = vunpack.i.h.bf16 %v3256_v27  ;;  %v3257_v51 = vunpack.i.l.bf16 %v3256_v27 }
 0x941   :  { %2975 = vmatpush3.bf16.msra.mxu0 %v1070_v26  ;;  %v1176_v23 = vsel %vm85_vm0, %v1166_v38, 0 }
 0x942   :  { %v994_v13 = vsel %vm78_vm1, %v3258_v46, %v3611_v60  ;;  %v993_v62 = vsel %vm78_vm1, %v3257_v51, %v3613_v61  ;;  %2976 = vmatprep.subr.bf16.mxu0 %v4120_v47 }
 0x943   :  { %v1071_v21 = vpack.c.bf16 %v994_v13, %v993_v62 }
 0x945   :  { %2977 = vmatpush3.bf16.msra.mxu0 %v1071_v21  ;;  %v1219_v21 = vld [vmem:[#allocation2 + $0x88] sm:$0xff] }
 0x946   :  { %2982 = vmatprep.subr.bf16.mxu0 %v4120_v47 }
 0x9b8   :  { %v1053_v5 = vpop.f32.mrb[12].mxu1 }
 0x9b9   :  { %v1054_v37 = vadd.f32 %v1053_v5, %v3779_v53  ;;  %v2966_v44 = vpop.f32.mrb[13].mxu1  ;;  %v1221_v5 = vpack.c.bf16 %v1219_v21, %v1219_v21 }
 0x9ba   :  { %v1056_v50 = vpop.f32.mrb[14].mxu1  ;;  %v2714_v44 = vld [vmem:[#allocation2 + $0x80] ss:$0 sm:$0xff] }
 0x9bb   :  { %v2967_v6 = vpop.f32.mrb[15].mxu1  ;;  %v1060_v49 = vsel %vm1059_vm11, %v1054_v37, -inf }
 0x9bc   :  { %1061 = vmax.xlane.f32.xlu0 %v1060_v49 }
 0xa49   :  { %v1062_v20 = vpop.xlane.xlu0 %1061 }
 0xa4a   :  { %v1063_v63 = vsub.f32 %v1054_v37, %v1062_v20  ;;  %v1231_v37 = vsel %vm85_vm0, %v1221_v5, 0 }
 0xa4b   :  { %2995 = vmatpush3.bf16.msra.mxu1 %v1231_v37 }
 0xa4c   :  { %v1064_v14 = vmul.f32 1.442695, %v1063_v63  ;;  %3006 = vmatprep.subr.bf16.mxu1 %v4120_v47 }
 0xa4e   :  { %3321 = vpow2.f32 %v1064_v14 }
 0xa58   :  { %v3322_v19 = vpop.eup %3321 }
 0xa59   :  { %v1066_v25 = vpack.c.bf16 %v3322_v19, %v3322_v19 }
 0xa5b   :  { %2979 = vmatmul.mubr.msk.bf16.vlgmr.msra.gmra.mrb[28].mxu0 %vm380_vm3, %v1066_v25  ;;  %v1276_v25 = vld [vmem:[#allocation2 + $0x98] sm:$0xff] }
 0xa5c   :  { %2983 = vmatpush3.bf16.msra.mxu0 %v3627_v42  ;;  %2984 = vmatprep.mubr.msk.bf16.mxu0 %vm3391_vm6, %v4120_v47 }
 0xa5d   :  { %2988 = vmatprep.subr.bf16.mxu0 %v4120_v47 }
 0xb2e   :  { %v1109_v22 = vpop.f32.mrb[28].mxu0 }
 0xb2f   :  { %3323 = vrcp.f32 %v1109_v22  ;;  %v2980_v9 = vpop.f32.mrb[29].mxu0 }
 0xb30   :  { %v1112_v24 = vpop.f32.mrb[30].mxu0 }
 0xb31   :  { %v2981_v56 = vpop.f32.mrb[31].mxu0  ;;  %v2716_v24 = vld [vmem:[#allocation2 + $0x90] ss:$0 sm:$0xff] }
 0xb39   :  { %v3324_v57 = vpop.eup %3323 }
 0xb3a   :  { %v1116_v45 = vpack.c.bf16 %v3324_v57, %v3324_v57 }
 0xb3c   :  { %1118 = vrot.lane.b32.xlu1 %v1116_v45, %s3388_s1 }
 0xbae   :  { %v1119_v4 = vpop.permute.xlu1 %1118 }
 0xbaf   :  { %2985 = vmatmul.mubr.msk.bf16.vlgmr.msra.gmra.mrb[32].mxu0 %vm473_vm5, %v1119_v4 }
 0xbb0   :  { %2990 = vmatprep.mubr.msk.bf16.mxu0 %vm3391_vm6, %v4120_v47  ;;  %2989 = vmatpush3.bf16.msra.mxu0 %v1176_v23 }
 0xbb1   :  { %3000 = vmatprep.subr.bf16.mxu0 %v4120_v47 }
 0xc82   :  { %v1157_v26 = vpop.f32.mrb[32].mxu0 }
 0xc83   :  { %v1163_v27 = vmul.f32 %v1157_v26, %v1109_v22  ;;  %v2986_v46 = vpop.f32.mrb[33].mxu0  ;;  %v1277_v22 = vld [vmem:[#allocation2 + $0xa0] sm:$0xff]  ;;  %v1329_v26 = vld [vmem:[#allocation2 + $0x118] sm:$0xff] }
 0xc84   :  { %v1160_v51 = vpop.f32.mrb[34].mxu0  ;;  %v1279_v9 = vpack.c.bf16 %v1277_v22, %v1276_v25 }
 0xc85   :  { %v1165_v13 = vpack.c.bf16 %v1163_v27, %v1163_v27  ;;  %v2987_v62 = vpop.f32.mrb[35].mxu0  ;;  %v1331_v27 = vpack.c.bf16 %v1329_v26, %v1329_v26  ;;  %v2718_v51 = vld [vmem:[#allocation2 + $0xa8] ss:$0 sm:$0xff] }
 0xc86   :  { %v3346_v26 = vld [vmem:[%s4100_s0 + $0x8] sm:$0xff] }
 0xc87   :  { %2991 = vmatmul.mubr.msk.bf16.vlgmr.msra.gmra.mrb[36].mxu0 %vm78_vm1, %v1165_v13  ;;  %v3808_v46 = vsel %vm85_vm0, %v1331_v27, 0 }
 0xc88   :  { %3002 = vmatprep.mubr.msk.bf16.mxu0 %vm3391_vm6, %v4120_v47  ;;  %3001 = vmatpush3.bf16.msra.mxu0 %v1279_v9 }
 0xc89   :  { %3012 = vmatprep.subr.mxu0 %v4120_v47 }
 0xd5a   :  { %v1212_v50 = vpop.f32.mrb[36].mxu0 }
 0xd5b   :  { %v1213_v6 = vadd.f32 %v2714_v44, %v1212_v50  ;;  %v2992_v49 = vpop.f32.mrb[37].mxu0 }
 0xd5c   :  { %v1215_v20 = vpop.f32.mrb[38].mxu0 }
 0xd5d   :  { %v1218_v63 = vadd.f32 %v1213_v6, %v3702_v8  ;;  %v2993_v14 = vpop.f32.mrb[39].mxu0  ;;  %v3815_v6 = vld [vmem:[#allocation2 + $0x120] ss:$0 sm:$0xff] }
 0xd5f   :  { %v1220_v19 = vpack.c.bf16 %v1218_v63, %v1218_v63 }
 0xd61   :  { %2997 = vmatmul.mubr.msk.bf16.vlgmr.msra.gmra.mrb[16].mxu1 %vm78_vm1, %v1220_v19 }
 0xd62   :  { %3008 = vmatprep.mubr.msk.bf16.mxu1 %vm3391_vm6, %v4120_v47  ;;  %3007 = vmatpush3.bf16.msra.mxu1 %v3808_v46 }
 0xd63   :  { %3167 = vmatprep.subr.msk.bf16.mxu1 %vm85_vm0, %v3426_v3 }
 0xe34   :  { %v1267_v56 = vpop.f32.mrb[16].mxu1 }
 0xe35   :  { %v1268_v57 = vadd.f32 %v2716_v24, %v1267_v56  ;;  %v2998_v45 = vpop.f32.mrb[17].mxu1  ;;  %v1389_v56 = vld [vmem:[#allocation2 + $0x200] sm:$0xf] }
 0xe36   :  { %v1270_v4 = vpop.f32.mrb[18].mxu1  ;;  %v3345_v45 = vld [vmem:[%s4100_s0] sm:$0xff] }
 0xe37   :  { %vm1273_vm12 = vcmp.ge.f32.partialorder %v1268_v57, 0.0  ;;  %v1274_v8 = vmul.f32 0.01, %v1268_v57  ;;  %v2999_v15 = vpop.f32.mrb[19].mxu1 }
 0xe39   :  { %v1275_v38 = vsel %vm1273_vm12, %v1268_v57, %v1274_v8 }
 0xe3a   :  { %v1278_v23 = vpack.c.bf16 %v1275_v38, %v1275_v38  ;;  %v2726_v38 = vld [vmem:[#allocation2 + $0x228] ss:$0 sm:$0xff] }
 0xe3c   :  { %3003 = vmatmul.mubr.msk.bf16.vlgmr.msra.gmra.mrb[40].mxu0 %vm689_vm10, %v1278_v23 }
 0xe3d   :  { %3014 = vmatprep.mubr.msk.f32.mxu0 %vm3391_vm6, %v4120_v47 }
 0xf0f   :  { %v1322_v13 = vpop.f32.mrb[40].mxu0 }
 0xf10   :  { %v1323_v62 = vadd.f32 %v2718_v51, %v1322_v13  ;;  %v3004_v21 = vpop.f32.mrb[41].mxu0 }
 0xf11   :  { %v1325_v5 = vpop.f32.mrb[42].mxu0 }
 0xf12   :  { %v1328_v37 = vadd.f32 %v1323_v62, %v1218_v63  ;;  %v3005_v44 = vpop.f32.mrb[43].mxu0  ;;  %v1387_v63 = vld [vmem:[#allocation2 + $0x1f0] sm:$0xff] }
 0xf14   :  { %v1330_v50 = vpack.c.bf16 %v1328_v37, %v1328_v37  ;;  %v3347_v37 = vld [vmem:[%s4100_s0 + $0x10] sm:$0xf] }
 0xf16   :  { %3009 = vmatmul.mubr.msk.bf16.vlgmr.msra.gmra.mrb[20].mxu1 %vm78_vm1, %v1330_v50 }
 0xf17   :  { %3024 = vmatpush3.bf16.msra.mxu1 %v3437_v10  ;;  %v1388_v10 = vld [vmem:[#allocation2 + $0x1f8] sm:$0xff] }
 0xfe9   :  { %v1377_v49 = vpop.f32.mrb[20].mxu1 }
 0xfea   :  { %v1378_v20 = vadd.f32 %v3815_v6, %v1377_v49  ;;  %v3010_v14 = vpop.f32.mrb[21].mxu1 }
 0xfeb   :  { %v1380_v19 = vpop.f32.mrb[22].mxu1 }
 0xfec   :  { %v1383_v3 = vmul.f32 0.5, %v1378_v20  ;;  %v3011_v25 = vpop.f32.mrb[23].mxu1 }
 0xfee   :  { %3325 = vtanh.f32 %v1383_v3 }
 0xff8   :  { %v3326_v22 = vpop.eup %3325 }
 0xff9   :  { %v1385_v9 = vadd.f32 1.0, %v3326_v22 }
 0xffb   :  { %v3818_v24 = vmul.f32 0.5, %v1385_v9  ;;  %v3348_v9 = vld [vmem:[#allocation2 + $0x8] ss:$0 sm:$0xff] }
 0xffd   :  { %3013 = vmatpush3.msk.msra.mxu0 %vm480_vm4, %v3818_v24 }
 0xffe   :  { %3015 = vmatmul.mubr.msk.f32.vlgmr.msra.gmra.mrb[44].mxu0 %vm1390_vm13, %v1387_v63 }
 0xfff   :  { %3017 = vmatprep.mubr.msk.f32.mxu0 %vm3391_vm6, %v4120_v47 }
0x1002   :  { %3018 = vmatmul.mubr.msk.f32.gmra.mrb[46].mxu0 %vm1390_vm13, %v1388_v10 }
0x1003   :  { %3020 = vmatprep.mubr.msk.f32.mxu0 %vm3391_vm6, %v4120_v47 }
0x1006   :  { %3021 = vmatmul.mubr.msk.f32.gmra.mrb[48].mxu0 %vm1390_vm13, %v1389_v56 }
0x10d1   :  { %v1469_v57 = vpop.f32.mrb[44].mxu0 }
0x10d2   :  { %v1483_v4 = vsub.f32 %v1469_v57, %v3345_v45  ;;  %v3016_v8 = vpop.f32.mrb[45].mxu0 }
0x10d4   :  { %v1486_v15 = vmul.f32 %v1483_v4, %v1483_v4 }
0x10d5   :  { %v1474_v23 = vpop.f32.mrb[46].mxu0 }
0x10d6   :  { %v1484_v27 = vsub.f32 %v1474_v23, %v3346_v26  ;;  %v3019_v51 = vpop.f32.mrb[47].mxu0  ;;  %v1494_v13 = vmul.f32 %v2726_v38, %v1486_v15 }
0x10d8   :  { %v1487_v62 = vmul.f32 %v1484_v27, %v1484_v27  ;;  %v3836_v49 = vadd.f32 %v1494_v13, %v3448_v16 }
0x10d9   :  { %v1479_v21 = vpop.f32.mrb[48].mxu0 }
0x10da   :  { %v1495_v5 = vmul.f32 %v2726_v38, %v1487_v62  ;;  %v1485_v44 = vsub.f32 %v1479_v21, %v3347_v37  ;;  %v3022_v50 = vpop.f32.mrb[49].mxu0 }
0x10dc   :  { %v3839_v20 = vadd.f32 %v1495_v5, %v3450_v17  ;;  %v1488_v14 = vmul.f32 %v1485_v44, %v1485_v44 }
0x10de   :  { %v1500_v19 = vpack.c.bf16 %v3839_v20, %v3836_v49  ;;  %v1496_v3 = vmul.f32 %v2726_v38, %v1488_v14 }
0x10e0   :  { %v3844_v25 = vadd.f32 %v1496_v3, %v3452_v18  ;;  %3025 = vmatprep.mubr.msk.bf16.mxu1 %vm78_vm1, %v1500_v19 }
0x10e2   :  { %v1501_v22 = vpack.c.bf16 %v3844_v25, %v3844_v25 }
0x10e4   :  { %3026 = vmatmul.mubr.msk.bf16.vlgmr.msra.gmra.mrb[24].mxu1 %vm78_vm1, %v1501_v22 }
0x11b7   :  { %v3027_v16 = vpop.f32.mrb[24].mxu1 }
0x11b8   :  { %v3850_v63 = vadd.f32 %v3348_v9, %v3027_v16  ;;  %v1542_v17 = vpop.f32.mrb[25].mxu1 }
0x11b9   :  { %v1543_v10 = vadd.f32 %v3348_v9, %v1542_v17  ;;  %v3028_v56 = vpop.f32.mrb[26].mxu1 }
0x11ba   :  { %v1545_v57 = vpop.f32.mrb[27].mxu1  ;;  %v1562_v18 = vrot.slane %v3850_v63, 4 }
0x11bb   :  { %v1559_v45 = vrot.slane %v1543_v10, 4  ;;  %v1546_v4 = vadd.f32 %v3348_v9, %v1545_v57  ;;  %v1568_v8 = vmul.f32 %v1543_v10, %v3492_v29  ;;  %v3858_v27 = vmul.f32 %v1543_v10, %v3498_v32 }
0x11bd   :  { %v1560_v15 = vrot.slane %v1546_v4, 4  ;;  %v1569_v38 = vmul.f32 %v1546_v4, %v3496_v31  ;;  %v1628_v23 = vpack.c.bf16 %v1546_v4, %v1543_v10  ;;  %v1567_v26 = vsel %vm85_vm0, %v3850_v63, %v1559_v45 }
0x11be   :  { %v3861_v51 = vmul.f32 %v1567_v26, %v3490_v28  ;;  %v3864_v13 = vmul.f32 %v1546_v4, %v3506_v39  ;;  %v3867_v62 = vmul.f32 %v1567_v26, %v3502_v36  ;;  %v1629_v26 = vpack.c.bf16 %v3850_v63, %v3850_v63 }
0x11bf   :  { %v1630_v29 = vpack.c.bf16 %v1569_v38, %v1568_v8  ;;  %3039 = vmatprep.mubr.msk.bf16.mxu0 %vm78_vm1, %v1628_v23  ;;  %v1563_v31 = vsel %vm85_vm0, %v1560_v15, %v1562_v18  ;;  %v1561_v21 = vsel %vm85_vm0, %v1559_v45, %v1560_v15  ;;  %v3259_v5 = vpack.i.bf16 %v1569_v38, %v1568_v8 }
0x11c0   :  { %v3873_v32 = vmul.f32 %v1563_v31, %v3500_v33  ;;  %v3876_v28 = vmul.f32 %v1561_v21, %v3494_v30  ;;  %v1633_v39 = vpack.c.bf16 %v3867_v62, %v3864_v13  ;;  %v3881_v36 = vmul.f32 %v1561_v21, %v3515_v52 }
0x11c1   :  { %1640 = vrot.lane.b32.xlu1 %v1630_v29, %s3388_s1  ;;  %v1577_v37 = vmul.f32 %v1563_v31, %v3512_v48  ;;  %v3274_v44 = vpack.i.bf16 %v3867_v62, %v3864_v13 }
0x11c2   :  { %v1632_v33 = vpack.c.bf16 %v3858_v27, %v3873_v32  ;;  %v1631_v30 = vpack.c.bf16 %v3876_v28, %v3861_v51  ;;  %v3269_v50 = vpack.i.bf16 %v3858_v27, %v3873_v32  ;;  %v3264_v52 = vpack.i.bf16 %v3876_v28, %v3861_v51 }
0x11c3   :  { %v1634_v14 = vpack.c.bf16 %v1577_v37, %v3881_v36  ;;  %v3279_v19 = vpack.i.bf16 %v1577_v37, %v3881_v36 }
0x11c4   :  { %1644 = vrot.lane.b32.xlu0 %v1632_v33, %s3388_s1 }
0x11c5   :  { %1642 = vrot.lane.b32.xlu1 %v1631_v30, %s3388_s1 }
0x11c9   :  { %1646 = vrot.lane.b32.xlu1 %v1633_v39, %s3388_s1 }
0x11cd   :  { %1648 = vrot.lane.b32.xlu1 %v1634_v14, %s3388_s1 }
0x11d1   :  { %3260 = vrot.lane.b32.xlu1 %v3259_v5, %s3389_s29 }
0x1233   :  { %v1641_v48 = vpop.permute.xlu1 %1640 }
0x1234   :  { %v1657_v3 = vsel %vm78_vm1, %v1641_v48, 0  ;;  %3168 = vmatprep.subr.msk.bf16.mxu0 %vm78_vm1, %v1641_v48 }
0x1235   :  { %3030 = vmatpush3.bf16.xpose.msra.mxu0 %v1657_v3 }
0x1236   :  { %v1645_v17 = vpop.permute.xlu0 %1644 }
0x1237   :  { %v1643_v22 = vpop.permute.xlu1 %1642  ;;  %v1663_v57 = vsel %vm78_vm1, %v1645_v17, 0 }
0x1238   :  { %3169 = vmatprep.subr.msk.bf16.mxu0 %vm78_vm1, %v1643_v22  ;;  %v1660_v9 = vsel %vm78_vm1, %v1643_v22, 0 }
0x123b   :  { %v1647_v16 = vpop.permute.xlu1 %1646 }
0x123c   :  { %v1666_v38 = vsel %vm78_vm1, %v1647_v16, 0 }
0x123d   :  { %3032 = vmatpush3.bf16.xpose.msra.mxu0 %v1660_v9 }
0x123e   :  { %3170 = vmatprep.subr.msk.bf16.mxu0 %vm78_vm1, %v1645_v17 }
0x123f   :  { %v1649_v10 = vpop.permute.xlu1 %1648 }
0x1240   :  { %v1669_v23 = vsel %vm78_vm1, %v1649_v10, 0 }
0x1243   :  { %v3261_v56 = vpop.permute.xlu1 %3260 }
0x1244   :  { %v3263_v45 = vunpack.i.h.bf16 %v3261_v56  ;;  %v3262_v4 = vunpack.i.l.bf16 %v3261_v56 }
0x1245   :  { %3034 = vmatpush3.bf16.xpose.msra.mxu0 %v1663_v57 }
0x1246   :  { %3171 = vmatprep.subr.msk.bf16.mxu0 %vm78_vm1, %v1647_v16  ;;  %v1618_v18 = vsel %vm78_vm1, %v3262_v4, %v3556_v59  ;;  %v1619_v8 = vsel %vm78_vm1, %v3263_v45, %v3554_v58 }
0x1247   :  { %v1739_v15 = vpack.c.bf16 %v1619_v8, %v1618_v18 }
0x1249   :  { %3043 = vmatprep.subr.bf16.mxu1 %v1739_v15 }
0x124a   :  { %3044 = vmatpush3.bf16.msra.mxu1 %v1739_v15 }
0x124d   :  { %3036 = vmatpush3.bf16.xpose.msra.mxu0 %v1666_v38 }
0x124e   :  { %3172 = vmatprep.subr.msk.bf16.mxu0 %vm78_vm1, %v1649_v10 }
0x1255   :  { %3038 = vmatpush3.bf16.xpose.msra.mxu0 %v1669_v23 }
0x1256   :  { %3175 = vmatprep.subr.msk.bf16.mxu0 %vm85_vm0, %v3645_v43 }
0x125c   :  { %3040 = vmatmul.mubr.msk.bf16.vlgmr.msra.gmra.mrb[52].mxu0 %vm78_vm1, %v1629_v26 }
0x125d   :  { %3070 = vmatpush3.bf16.msra.mxu0 %v3651_v35 }
0x125e   :  { %3081 = vmatprep.subr.bf16.mxu0 %v4120_v47 }
0x132f   :  { %v3041_v27 = vpop.f32.mrb[52].mxu0 }
0x1330   :  { %v1714_v51 = vadd.f32 %v3041_v27, %v3594_v0  ;;  %v1705_v13 = vpop.f32.mrb[53].mxu0 }
0x1331   :  { %v3042_v62 = vpop.f32.mrb[54].mxu0  ;;  %v1706_v29 = vadd.f32 %v1705_v13, %v3596_v1 }
0x1332   :  { %v1708_v31 = vpop.f32.mrb[55].mxu0  ;;  %v1725_v21 = vsel %vm387_vm2, %v1714_v51, -inf }
0x1333   :  { %v1709_v43 = vadd.f32 %v1708_v31, %v3599_v7  ;;  %1726 = vmax.xlane.f32.xlu1 %v1725_v21  ;;  %v1719_v35 = vsel %vm380_vm3, %v1706_v29, -inf }
0x1335   :  { %v1722_v63 = vsel %vm380_vm3, %v1709_v43, -inf }
0x1336   :  { %1723 = vmax.xlane.f32.xlu0 %v1722_v63 }
0x1337   :  { %1720 = vmax.xlane.f32.xlu1 %v1719_v35 }
0x1348   :  { %3270 = vrot.lane.b32.xlu1 %v3269_v50, %s3389_s29 }
0x134c   :  { %3265 = vrot.lane.b32.xlu0 %v3264_v52, %s3389_s29  ;;  %3275 = vrot.lane.b32.xlu1 %v3274_v44, %s3389_s29 }
0x1350   :  { %3280 = vrot.lane.b32.xlu1 %v3279_v19, %s3389_s29 }
0x13c0   :  { %v1727_v0 = vpop.xlane.xlu1 %1726 }
0x13c1   :  { %v1730_v28 = vsub.f32 %v1714_v51, %v1727_v0 }
0x13c3   :  { %v1724_v1 = vpop.xlane.xlu0 %1723  ;;  %v1735_v48 = vmul.f32 1.442695, %v1730_v28  ;;  %v4123_v28 = vld [vmem:[#allocation7_spill] sm:$0xff] }
0x13c4   :  { %v1729_v5 = vsub.f32 %v1709_v43, %v1724_v1  ;;  %v1721_v32 = vpop.xlane.xlu1 %1720 }
0x13c5   :  { %v1728_v7 = vsub.f32 %v1706_v29, %v1721_v32 }
0x13c6   :  { %v1733_v39 = vmul.f32 1.442695, %v1729_v5 }
0x13c7   :  { %v1731_v36 = vmul.f32 1.442695, %v1728_v7  ;;  %v3266_v37 = vpop.permute.xlu0 %3265 }
0x13c8   :  { %3327 = vpow2.f32 %v1733_v39  ;;  %v3268_v33 = vunpack.i.h.bf16 %v3266_v37  ;;  %v3267_v30 = vunpack.i.l.bf16 %v3266_v37  ;;  %v3271_v14 = vpop.permute.xlu1 %3270 }
0x13c9   :  { %3329 = vpow2.f32 %v1731_v36  ;;  %v3273_v50 = vunpack.i.h.bf16 %v3271_v14  ;;  %v3272_v52 = vunpack.i.l.bf16 %v3271_v14 }
0x13ca   :  { %v1620_v44 = vsel %vm78_vm1, %v3267_v30, %v3566_v12  ;;  %v1621_v19 = vsel %vm78_vm1, %v3268_v33, %v3564_v11  ;;  %3331 = vpow2.f32 %v1735_v48 }
0x13cb   :  { %v1740_v3 = vpack.c.bf16 %v1621_v19, %v1620_v44  ;;  %v1622_v22 = vsel %vm78_vm1, %v3272_v52, %v3574_v41  ;;  %v1623_v16 = vsel %vm78_vm1, %v3273_v50, %v3572_v40  ;;  %v4124_v19 = vld [vmem:[#allocation6_spill] sm:$0xff] }
0x13cc   :  { %v3276_v9 = vpop.permute.xlu1 %3275  ;;  %v1741_v17 = vpack.c.bf16 %v1623_v16, %v1622_v22 }
0x13cd   :  { %v3278_v10 = vunpack.i.h.bf16 %v3276_v9  ;;  %v3277_v56 = vunpack.i.l.bf16 %v3276_v9  ;;  %3045 = vmatprep.subr.bf16.mxu1 %v1740_v3 }
0x13ce   :  { %3046 = vmatpush3.bf16.msra.mxu1 %v1740_v3 }
0x13cf   :  { %3047 = vmatprep.subr.bf16.mxu1 %v1741_v17  ;;  %v1624_v57 = vsel %vm78_vm1, %v3277_v56, %v3584_v55  ;;  %v1625_v45 = vsel %vm78_vm1, %v3278_v10, %v3582_v54  ;;  %v3349_v10 = vld [vmem:[#allocation2 + $0x18] ss:$0 sm:$0xff] }
0x13d0   :  { %v3281_v4 = vpop.permute.xlu1 %3280  ;;  %v1742_v18 = vpack.c.bf16 %v1625_v45, %v1624_v57 }
0x13d1   :  { %v3283_v8 = vunpack.i.h.bf16 %v3281_v4  ;;  %v3282_v15 = vunpack.i.l.bf16 %v3281_v4 }
0x13d2   :  { %v3328_v38 = vpop.eup %3327  ;;  %3048 = vmatpush3.bf16.msra.mxu1 %v1741_v17 }
0x13d3   :  { %v3330_v23 = vpop.eup %3329  ;;  %3049 = vmatprep.subr.bf16.mxu1 %v1742_v18  ;;  %v1626_v26 = vsel %vm78_vm1, %v3282_v15, %v3613_v61  ;;  %v1627_v27 = vsel %vm78_vm1, %v3283_v8, %v3611_v60 }
0x13d4   :  { %v1737_v51 = vpack.c.bf16 %v3328_v38, %v3330_v23  ;;  %v1743_v13 = vpack.c.bf16 %v1627_v27, %v1626_v26  ;;  %v3332_v62 = vpop.eup %3331  ;;  %v4126_v23 = vld [vmem:[#allocation9_spill] sm:$0xff] }
0x13d5   :  { %v1738_v29 = vpack.c.bf16 %v3332_v62, %v3332_v62 }
0x13d6   :  { %3050 = vmatpush3.bf16.msra.mxu1 %v1742_v18  ;;  %3053 = vmatprep.mubr.msk.bf16.mxu1 %vm380_vm3, %v1737_v51 }
0x13d7   :  { %3051 = vmatprep.subr.bf16.mxu1 %v1743_v13 }
0x13da   :  { %3052 = vmatpush3.bf16.msra.mxu1 %v1743_v13 }
0x13db   :  { %3173 = vmatprep.subr.msk.bf16.mxu1 %vm480_vm4, %v3621_v34 }
0x13dd   :  { %3054 = vmatmul.mubr.msk.bf16.vlgmr.msra.gmra.mrb[28].mxu1 %vm380_vm3, %v1738_v29 }
0x13de   :  { %3058 = vmatpush3.bf16.msra.mxu1 %v3627_v42 }
0x13df   :  { %3174 = vmatprep.subr.msk.bf16.mxu1 %vm85_vm0, %v3634_v2  ;;  %v4122_v2 = vld [vmem:[#allocation5_spill] sm:$0xff] }
0x14b0   :  { %v3055_v31 = vpop.f32.mrb[28].mxu1 }
0x14b1   :  { %3333 = vrcp.f32 %v3055_v31  ;;  %v1784_v21 = vpop.f32.mrb[29].mxu1 }
0x14b2   :  { %v3056_v43 = vpop.f32.mrb[30].mxu1  ;;  %3335 = vrcp.f32 %v1784_v21 }
0x14b3   :  { %v1787_v63 = vpop.f32.mrb[31].mxu1 }
0x14b4   :  { %3337 = vrcp.f32 %v1787_v63 }
0x14bb   :  { %v3334_v35 = vpop.eup %3333 }
0x14bc   :  { %v1802_v0 = vpack.c.bf16 %v3334_v35, %v3334_v35  ;;  %v3336_v1 = vpop.eup %3335 }
0x14be   :  { %v3338_v5 = vpop.eup %3337  ;;  %1807 = vrot.lane.b32.xlu1 %v1802_v0, %s3388_s1 }
0x14bf   :  { %v1801_v34 = vpack.c.bf16 %v3338_v5, %v3336_v1 }
0x14c1   :  { %1805 = vrot.lane.b32.xlu0 %v1801_v34, %s3388_s1  ;;  %v2155_v34 = vld [vmem:[#allocation2 + $0xd0] sm:$0xff] }
0x1530   :  { %v1808_v7 = vpop.permute.xlu1 %1807 }
0x1533   :  { %v1806_v32 = vpop.permute.xlu0 %1805 }
0x1534   :  { %3059 = vmatprep.mubr.msk.bf16.mxu1 %vm473_vm5, %v1806_v32  ;;  %v2158_v32 = vpack.c.bf16 %v2155_v34, %v2155_v34 }
0x1535   :  { %3060 = vmatmul.mubr.msk.bf16.vlgmr.msra.gmra.mrb[32].mxu1 %vm473_vm5, %v1808_v7 }
0x1536   :  { %3064 = vmatpush3.bf16.msra.mxu1 %v4122_v2  ;;  %v2171_v7 = vsel %vm85_vm0, %v2158_v32, 0 }
0x1537   :  { %3075 = vmatprep.subr.bf16.mxu1 %v4123_v28 }
0x1608   :  { %v3061_v39 = vpop.f32.mrb[32].mxu1 }
0x1609   :  { %v1865_v36 = vmul.f32 %v3061_v39, %v3055_v31  ;;  %v1849_v37 = vpop.f32.mrb[33].mxu1  ;;  %v2101_v39 = vld [vmem:[#allocation2 + $0xc0] sm:$0xff] }
0x160a   :  { %v1863_v33 = vmul.f32 %v1849_v37, %v1784_v21  ;;  %v3062_v30 = vpop.f32.mrb[34].mxu1 }
0x160b   :  { %v1852_v14 = vpop.f32.mrb[35].mxu1  ;;  %v1867_v48 = vpack.c.bf16 %v1865_v36, %v1865_v36  ;;  %v3350_v36 = vld [vmem:[%s4100_s0 + $0x18] sm:$0x3] }
0x160c   :  { %v1864_v50 = vmul.f32 %v1852_v14, %v1787_v63 }
0x160e   :  { %v1866_v52 = vpack.c.bf16 %v1864_v50, %v1863_v33  ;;  %v2103_v33 = vpack.c.bf16 %v2101_v39, %v2101_v39 }
0x1610   :  { %3065 = vmatprep.mubr.msk.bf16.mxu1 %vm78_vm1, %v1866_v52  ;;  %v2113_v52 = vsel %vm85_vm0, %v2103_v33, 0 }
0x1611   :  { %3066 = vmatmul.mubr.msk.bf16.vlgmr.msra.gmra.mrb[36].mxu1 %vm78_vm1, %v1867_v48 }
0x1612   :  { %3076 = vmatpush3.bf16.msra.mxu1 %v4123_v28  ;;  %v2742_v28 = vld [vmem:[#allocation2 + $0xb8] ss:$0 sm:$0xff] }
0x1613   :  { %3087 = vmatprep.subr.bf16.mxu1 %v4120_v47 }
0x16e4   :  { %v3067_v44 = vpop.f32.mrb[36].mxu1 }
0x16e5   :  { %v1917_v3 = vadd.f32 %v3067_v44, %v4124_v19  ;;  %v1908_v22 = vpop.f32.mrb[37].mxu1 }
0x16e6   :  { %v1909_v16 = vadd.f32 %v4124_v19, %v1908_v22  ;;  %v3068_v9 = vpop.f32.mrb[38].mxu1 }
0x16e7   :  { %v1911_v17 = vpop.f32.mrb[39].mxu1  ;;  %v3969_v57 = vadd.f32 %v1917_v3, %v3844_v25  ;;  %v2049_v25 = vld [vmem:[#allocation2 + $0xb0] sm:$0xff]  ;;  %v4127_v3 = vld [vmem:[#allocation10_spill] sm:$0xff] }
0x16e8   :  { %v1912_v56 = vadd.f32 %v3349_v10, %v1911_v17  ;;  %v3972_v45 = vadd.f32 %v1909_v16, %v3836_v49  ;;  %v2050_v15 = vpack.c.bf16 %v2049_v25, %v2049_v25 }
0x16e9   :  { %v1926_v8 = vpack.c.bf16 %v3969_v57, %v3969_v57 }
0x16ea   :  { %v3975_v4 = vadd.f32 %v1912_v56, %v3839_v20  ;;  %v2052_v49 = vsel %vm85_vm0, %v2050_v15, 0  ;;  %v4125_v20 = vld [vmem:[#allocation8_spill] sm:$0xff] }
0x16ec   :  { %v1925_v18 = vpack.c.bf16 %v3975_v4, %v3972_v45 }
0x16ee   :  { %3071 = vmatprep.mubr.msk.bf16.mxu0 %vm78_vm1, %v1925_v18 }
0x16ef   :  { %3072 = vmatmul.mubr.msk.bf16.vlgmr.msra.gmra.mrb[56].mxu0 %vm78_vm1, %v1926_v8 }
0x16f0   :  { %3083 = vmatprep.mubr.msk.bf16.mxu0 %vm3391_vm6, %v4120_v47  ;;  %3082 = vmatpush3.bf16.msra.mxu0 %v2052_v49 }
0x16f1   :  { %3176 = vmatprep.subr.msk.bf16.mxu0 %vm85_vm0, %v2158_v32 }
0x16f7   :  { %3084 = vmatmul.mubr.msk.bf16.vlgmr.msra.gmra.mrb[60].mxu0 %vm78_vm1, %v4125_v20 }
0x16f8   :  { %3094 = vmatpush3.bf16.msra.mxu0 %v2171_v7  ;;  %v3354_v7 = vld [vmem:[#allocation2 + $0x170] sm:$0xff] }
0x16f9   :  { %3113 = vmatprep.subr.bf16.mxu0 %v4120_v47 }
0x17c2   :  { %v3073_v38 = vpop.f32.mrb[56].mxu0 }
0x17c3   :  { %v1976_v26 = vadd.f32 %v3073_v38, %v4126_v23  ;;  %v1967_v27 = vpop.f32.mrb[57].mxu0 }
0x17c4   :  { %v1968_v51 = vadd.f32 %v4126_v23, %v1967_v27  ;;  %v3074_v13 = vpop.f32.mrb[58].mxu0  ;;  %v2745_v27 = vld [vmem:[#allocation2 + $0xd8] ss:$0 sm:$0xff] }
0x17c5   :  { %v1986_v62 = vmul.f32 0.01, %v1976_v26  ;;  %v1970_v29 = vpop.f32.mrb[59].mxu0  ;;  %vm1983_vm14 = vcmp.ge.f32.partialorder %v1976_v26, 0.0 }
0x17c6   :  { %v1984_v31 = vmul.f32 0.01, %v1968_v51  ;;  %v1971_v21 = vadd.f32 %v4126_v23, %v1970_v29  ;;  %vm1981_vm15 = vcmp.ge.f32.partialorder %v1968_v51, 0.0 }
0x17c7   :  { %v1989_v63 = vsel %vm1983_vm14, %v1976_v26, %v1986_v62 }
0x17c8   :  { %vm1982_vm2 = vcmp.ge.f32.partialorder %v1971_v21, 0.0  ;;  %v1985_v43 = vmul.f32 0.01, %v1971_v21  ;;  %v1987_v35 = vsel %vm1981_vm15, %v1968_v51, %v1984_v31  ;;  %v1991_v5 = vpack.c.bf16 %v1989_v63, %v1989_v63 }
0x17ca   :  { %v1988_v0 = vsel %vm1982_vm2, %v1971_v21, %v1985_v43  ;;  %v2088_v2 = vpop.f32.mrb[60].mxu0  ;;  %v3351_v43 = vld [vmem:[#allocation2 + $0x148] sm:$0xff] }
0x17cb   :  { %v1990_v1 = vpack.c.bf16 %v1988_v0, %v1987_v35  ;;  %v2094_v37 = vadd.f32 %v3350_v36, %v2088_v2  ;;  %v3085_v30 = vpop.f32.mrb[61].mxu0  ;;  %v3352_v0 = vld [vmem:[#allocation2 + $0x150] sm:$0xff]  ;;  %v3356_v36 = vld [vmem:[#allocation2 + $0x180] sm:$0xff] }
0x17cc   :  { %v2091_v14 = vpop.f32.mrb[62].mxu0 }
0x17cd   :  { %3077 = vmatprep.mubr.msk.bf16.mxu1 %vm689_vm10, %v1990_v1  ;;  %v4001_v50 = vadd.f32 %v2742_v28, %v2094_v37  ;;  %v3086_v48 = vpop.f32.mrb[63].mxu0  ;;  %v3355_v28 = vld [vmem:[#allocation2 + $0x158] sm:$0xff] }
0x17ce   :  { %3078 = vmatmul.mubr.msk.bf16.vlgmr.msra.gmra.mrb[40].mxu1 %vm689_vm10, %v1991_v5  ;;  %v3353_v5 = vld [vmem:[#allocation2 + $0x178] sm:$0xff]  ;;  %v3357_v48 = vld [vmem:[#allocation2 + $0x160] sm:$0xff] }
0x17cf   :  { %3089 = vmatprep.mubr.msk.bf16.mxu1 %vm3391_vm6, %v4120_v47  ;;  %3088 = vmatpush3.bf16.msra.mxu1 %v2113_v52  ;;  %v2102_v44 = vpack.c.bf16 %v4001_v50, %v4001_v50 }
0x17d0   :  { %3099 = vmatprep.subr.bf16.mxu1 %v4120_v47 }
0x17d6   :  { %3090 = vmatmul.mubr.msk.bf16.vlgmr.msra.gmra.mrb[44].mxu1 %vm78_vm1, %v2102_v44 }
0x17d7   :  { %3109 = vmatprep.mubr.msk.bf16.mxu1 %vm3391_vm6, %v4120_v47 }
0x18a1   :  { %v3079_v19 = vpop.f32.mrb[40].mxu1 }
0x18a2   :  { %v2041_v22 = vadd.f32 %v3079_v19, %v4127_v3  ;;  %v2032_v16 = vpop.f32.mrb[41].mxu1  ;;  %v3358_v19 = vld [vmem:[#allocation2 + $0x168] sm:$0xff] }
0x18a3   :  { %v2033_v9 = vadd.f32 %v4127_v3, %v2032_v16  ;;  %v3080_v17 = vpop.f32.mrb[42].mxu1  ;;  %v3359_v16 = vld [vmem:[#allocation2 + $0x188] sm:$0xff] }
0x18a4   :  { %v2035_v10 = vpop.f32.mrb[43].mxu1  ;;  %v2048_v18 = vadd.f32 %v2041_v22, %v3969_v57 }
0x18a5   :  { %v2036_v56 = vadd.f32 %v4127_v3, %v2035_v10  ;;  %v2046_v8 = vadd.f32 %v2033_v9, %v3972_v45  ;;  %v3360_v10 = vld [vmem:[#allocation2 + $0x190] sm:$0xff] }
0x18a6   :  { %v2157_v49 = vpack.c.bf16 %v2048_v18, %v2048_v18 }
0x18a7   :  { %v2047_v25 = vadd.f32 %v2036_v56, %v3975_v4 }
0x18a9   :  { %v2156_v15 = vpack.c.bf16 %v2047_v25, %v2046_v8  ;;  %v4020_v20 = vpop.f32.mrb[44].mxu1 }
0x18aa   :  { %v3091_v38 = vpop.f32.mrb[45].mxu1 }
0x18ab   :  { %3095 = vmatprep.mubr.msk.bf16.mxu0 %vm78_vm1, %v2156_v15  ;;  %v2152_v23 = vpop.f32.mrb[46].mxu1 }
0x18ac   :  { %3096 = vmatmul.mubr.msk.bf16.vlgmr.msra.gmra.mrb[64].mxu0 %vm78_vm1, %v2157_v49  ;;  %v3092_v26 = vpop.f32.mrb[47].mxu1 }
0x18ad   :  { %3123 = vmatprep.mubr.msk.bf16.mxu0 %vm3391_vm6, %v4120_v47 }
0x197f   :  { %v3097_v57 = vpop.f32.mrb[64].mxu0 }
0x1980   :  { %v2216_v51 = vadd.f32 %v3097_v57, %v2745_v27  ;;  %v2207_v45 = vpop.f32.mrb[65].mxu0 }
0x1981   :  { %v2208_v13 = vadd.f32 %v2745_v27, %v2207_v45  ;;  %v3098_v4 = vpop.f32.mrb[66].mxu0 }
0x1982   :  { %v2210_v62 = vpop.f32.mrb[67].mxu0  ;;  %v2227_v21 = vrot.slane %v2216_v51, 4 }
0x1983   :  { %v2224_v29 = vrot.slane %v2208_v13, 4  ;;  %v2211_v31 = vadd.f32 %v2745_v27, %v2210_v62  ;;  %v2233_v63 = vmul.f32 %v3351_v43, %v2208_v13  ;;  %v2238_v2 = vmul.f32 %v3354_v7, %v2208_v13 }
0x1985   :  { %v2225_v35 = vrot.slane %v2211_v31, 4  ;;  %v2234_v1 = vmul.f32 %v3352_v0, %v2211_v31  ;;  %v2239_v34 = vmul.f32 %v3353_v5, %v2211_v31  ;;  %v2232_v32 = vsel %vm85_vm0, %v2216_v51, %v2224_v29  ;;  %v2743_v51 = vld [vmem:[#allocation2 + $0xc8] ss:$0 sm:$0xff] }
0x1986   :  { %v2235_v39 = vmul.f32 %v3355_v28, %v2232_v32  ;;  %v2240_v37 = vmul.f32 %v3356_v36, %v2232_v32  ;;  %v2150_v13 = vadd.f32 %v2743_v51, %v4020_v20 }
0x1987   :  { %v3284_v33 = vpack.i.bf16 %v2234_v1, %v2233_v63  ;;  %v2294_v30 = vpack.c.bf16 %v2234_v1, %v2233_v63  ;;  %v2226_v14 = vsel %vm85_vm0, %v2224_v29, %v2225_v35  ;;  %v2228_v52 = vsel %vm85_vm0, %v2225_v35, %v2227_v21 }
0x1988   :  { %v2236_v44 = vmul.f32 %v3357_v48, %v2226_v14  ;;  %v2237_v3 = vmul.f32 %v3358_v19, %v2228_v52  ;;  %v3299_v22 = vpack.i.bf16 %v2240_v37, %v2239_v34  ;;  %v2241_v9 = vmul.f32 %v3359_v16, %v2226_v14 }
0x1989   :  { %3285 = vrot.lane.b32.xlu1 %v3284_v33, %s3388_s1  ;;  %v2303_v17 = vsel %vm78_vm1, %v2294_v30, 0  ;;  %v2242_v56 = vmul.f32 %v3360_v10, %v2228_v52  ;;  %v2297_v18 = vpack.c.bf16 %v2240_v37, %v2239_v34  ;;  %v2293_v4 = vpack.c.bf16 %v2150_v13, %v2150_v13  ;;  %v2516_v13 = vld [vmem:[#allocation2 + $0xf0] sm:$0xff] }
0x198a   :  { %3100 = vmatpush3.bf16.xpose.msra.mxu1 %v2303_v17  ;;  %v3289_v8 = vpack.i.bf16 %v2236_v44, %v2235_v39  ;;  %v3294_v25 = vpack.i.bf16 %v2238_v2, %v2237_v3  ;;  %v2295_v15 = vpack.c.bf16 %v2236_v44, %v2235_v39  ;;  %v2296_v49 = vpack.c.bf16 %v2238_v2, %v2237_v3 }
0x198b   :  { %3101 = vmatprep.subr.bf16.mxu1 %v4120_v47  ;;  %v3304_v38 = vpack.i.bf16 %v2242_v56, %v2241_v9  ;;  %v2298_v23 = vpack.c.bf16 %v2242_v56, %v2241_v9  ;;  %v2312_v57 = vsel %vm78_vm1, %v2297_v18, 0 }
0x198c   :  { %v2306_v26 = vsel %vm78_vm1, %v2295_v15, 0  ;;  %v2309_v27 = vsel %vm78_vm1, %v2296_v49, 0 }
0x198d   :  { %3290 = vrot.lane.b32.xlu1 %v3289_v8, %s3388_s1  ;;  %v2315_v45 = vsel %vm78_vm1, %v2298_v23, 0 }
0x1991   :  { %3295 = vrot.lane.b32.xlu1 %v3294_v25, %s3388_s1 }
0x1992   :  { %3102 = vmatpush3.bf16.xpose.msra.mxu1 %v2306_v26 }
0x1993   :  { %3103 = vmatprep.subr.bf16.mxu1 %v4120_v47 }
0x1995   :  { %3300 = vrot.lane.b32.xlu1 %v3299_v22, %s3388_s1 }
0x1999   :  { %3305 = vrot.lane.b32.xlu1 %v3304_v38, %s3388_s1 }
0x199a   :  { %3104 = vmatpush3.bf16.xpose.msra.mxu1 %v2309_v27 }
0x199b   :  { %3105 = vmatprep.subr.bf16.mxu1 %v4120_v47 }
0x19a2   :  { %3106 = vmatpush3.bf16.xpose.msra.mxu1 %v2312_v57 }
0x19a3   :  { %3107 = vmatprep.subr.bf16.mxu1 %v4120_v47 }
0x19aa   :  { %3108 = vmatpush3.bf16.xpose.msra.mxu1 %v2315_v45 }
0x19ab   :  { %3139 = vmatprep.subr.bf16.mxu1 %v4120_v47 }
0x19b1   :  { %3110 = vmatmul.mubr.msk.bf16.vlgmr.msra.gmra.mrb[48].mxu1 %vm78_vm1, %v2293_v4  ;;  %v2518_v4 = vpack.c.bf16 %v2516_v13, %v2516_v13 }
0x19b2   :  { %3141 = vmatprep.mubr.msk.bf16.mxu1 %vm3391_vm6, %v4120_v47 }
0x19fb   :  { %v3286_v62 = vpop.permute.xlu1 %3285 }
0x19fc   :  { %v3288_v29 = vunpack.i.h.bf16 %v3286_v62  ;;  %v3287_v31 = vunpack.i.l.bf16 %v3286_v62  ;;  %v2528_v62 = vsel %vm85_vm0, %v2518_v4, 0 }
0x19fd   :  { %3140 = vmatpush3.bf16.msra.mxu1 %v2528_v62 }
0x19fe   :  { %v2284_v21 = vsel %vm78_vm1, %v3288_v29, %v3554_v58  ;;  %v2283_v43 = vsel %vm78_vm1, %v3287_v31, %v3556_v59  ;;  %3151 = vmatprep.subr.bf16.mxu1 %v4120_v47  ;;  %v2751_v29 = vld [vmem:[#allocation2 + $0xe8] ss:$0 sm:$0xff] }
0x19ff   :  { %v2364_v63 = vpack.c.bf16 %v2284_v21, %v2283_v43  ;;  %v3291_v20 = vpop.permute.xlu1 %3290 }
0x1a00   :  { %v3293_v35 = vunpack.i.h.bf16 %v3291_v20  ;;  %v3292_v0 = vunpack.i.l.bf16 %v3291_v20 }
0x1a01   :  { %3114 = vmatpush3.bf16.msra.mxu0 %v2364_v63 }
0x1a02   :  { %v2286_v1 = vsel %vm78_vm1, %v3293_v35, %v3564_v11  ;;  %v2285_v5 = vsel %vm78_vm1, %v3292_v0, %v3566_v12  ;;  %3115 = vmatprep.subr.bf16.mxu0 %v4120_v47 }
0x1a03   :  { %v2365_v34 = vpack.c.bf16 %v2286_v1, %v2285_v5  ;;  %v3296_v32 = vpop.permute.xlu1 %3295  ;;  %v2573_v1 = vld [vmem:[#allocation2 + $0x100] sm:$0xff]  ;;  %v2574_v5 = vld [vmem:[#allocation2 + $0x108] sm:$0xff] }
0x1a04   :  { %v3298_v7 = vunpack.i.h.bf16 %v3296_v32  ;;  %v3297_v58 = vunpack.i.l.bf16 %v3296_v32  ;;  %v2753_v32 = vld [vmem:[#allocation2 + $0xf8] ss:$0 sm:$0xff] }
0x1a05   :  { %3116 = vmatpush3.bf16.msra.mxu0 %v2365_v34  ;;  %v2576_v34 = vpack.c.bf16 %v2574_v5, %v2573_v1 }
0x1a06   :  { %v2288_v59 = vsel %vm78_vm1, %v3298_v7, %v3572_v40  ;;  %v2287_v2 = vsel %vm78_vm1, %v3297_v58, %v3574_v41  ;;  %3117 = vmatprep.subr.bf16.mxu0 %v4120_v47 }
0x1a07   :  { %v2366_v28 = vpack.c.bf16 %v2288_v59, %v2287_v2  ;;  %v3301_v11 = vpop.permute.xlu1 %3300 }
0x1a08   :  { %v3303_v39 = vunpack.i.h.bf16 %v3301_v11  ;;  %v3302_v36 = vunpack.i.l.bf16 %v3301_v11 }
0x1a09   :  { %3118 = vmatpush3.bf16.msra.mxu0 %v2366_v28 }
0x1a0a   :  { %v2290_v12 = vsel %vm78_vm1, %v3303_v39, %v3582_v54  ;;  %v2289_v37 = vsel %vm78_vm1, %v3302_v36, %v3584_v55  ;;  %3119 = vmatprep.subr.bf16.mxu0 %v4120_v47 }
0x1a0b   :  { %v2367_v33 = vpack.c.bf16 %v2290_v12, %v2289_v37  ;;  %v3306_v40 = vpop.permute.xlu1 %3305 }
0x1a0c   :  { %v3308_v30 = vunpack.i.h.bf16 %v3306_v40  ;;  %v3307_v14 = vunpack.i.l.bf16 %v3306_v40 }
0x1a0d   :  { %3120 = vmatpush3.bf16.msra.mxu0 %v2367_v33 }
0x1a0e   :  { %v2292_v41 = vsel %vm78_vm1, %v3308_v30, %v3611_v60  ;;  %v2291_v52 = vsel %vm78_vm1, %v3307_v14, %v3613_v61  ;;  %3121 = vmatprep.subr.bf16.mxu0 %v4120_v47 }
0x1a0f   :  { %v2368_v48 = vpack.c.bf16 %v2292_v41, %v2291_v52 }
0x1a11   :  { %3122 = vmatpush3.bf16.msra.mxu0 %v2368_v48 }
0x1a12   :  { %3127 = vmatprep.subr.bf16.mxu0 %v4120_v47 }
0x1a84   :  { %v2351_v54 = vpop.f32.mrb[48].mxu1 }
0x1a85   :  { %v2352_v55 = vadd.f32 %v2351_v54, %v3779_v53  ;;  %v3111_v44 = vpop.f32.mrb[49].mxu1 }
0x1a86   :  { %v2354_v19 = vpop.f32.mrb[50].mxu1 }
0x1a87   :  { %v2357_v3 = vsel %vm1059_vm11, %v2352_v55, -inf  ;;  %v3112_v22 = vpop.f32.mrb[51].mxu1 }
0x1a88   :  { %2358 = vmax.xlane.f32.xlu0 %v2357_v3 }
0x1b15   :  { %v2359_v16 = vpop.xlane.xlu0 %2358 }
0x1b16   :  { %v2360_v60 = vsub.f32 %v2352_v55, %v2359_v16 }
0x1b18   :  { %v2361_v9 = vmul.f32 1.442695, %v2360_v60 }
0x1b1a   :  { %3339 = vpow2.f32 %v2361_v9 }
0x1b24   :  { %v3340_v61 = vpop.eup %3339 }
0x1b25   :  { %v2363_v17 = vpack.c.bf16 %v3340_v61, %v3340_v61 }
0x1b27   :  { %3124 = vmatmul.mubr.msk.bf16.vlgmr.msra.gmra.mrb[68].mxu0 %vm380_vm3, %v2363_v17  ;;  %vm2678_vm3 = vcmask 60416  }
0x1b28   :  { %3128 = vmatpush3.bf16.msra.mxu0 %v3627_v42  ;;  %3129 = vmatprep.mubr.msk.bf16.mxu0 %vm3391_vm6, %v4120_v47  ;;  %v2461_v42 = vld [vmem:[#allocation2 + $0xe0] sm:$0xff] }
0x1b29   :  { %3133 = vmatprep.subr.bf16.mxu0 %v4120_v47  ;;  %v2463_v49 = vpack.c.bf16 %v2461_v42, %v2461_v42 }
0x1b2b   :  { %v2473_v38 = vsel %vm85_vm0, %v2463_v49, 0 }
0x1bfa   :  { %v2406_v53 = vpop.f32.mrb[68].mxu0 }
0x1bfb   :  { %3341 = vrcp.f32 %v2406_v53  ;;  %v3125_v10 = vpop.f32.mrb[69].mxu0 }
0x1bfc   :  { %v2409_v56 = vpop.f32.mrb[70].mxu0 }
0x1bfd   :  { %v3126_v18 = vpop.f32.mrb[71].mxu0 }
0x1c05   :  { %v3342_v8 = vpop.eup %3341 }
0x1c06   :  { %v2413_v25 = vpack.c.bf16 %v3342_v8, %v3342_v8 }
0x1c08   :  { %2415 = vrot.lane.b32.xlu1 %v2413_v25, %s3388_s1 }
0x1c7a   :  { %v2416_v15 = vpop.permute.xlu1 %2415 }
0x1c7b   :  { %3130 = vmatmul.mubr.msk.bf16.vlgmr.msra.gmra.mrb[72].mxu0 %vm473_vm5, %v2416_v15 }
0x1c7c   :  { %3135 = vmatprep.mubr.msk.bf16.mxu0 %vm3391_vm6, %v4120_v47  ;;  %3134 = vmatpush3.bf16.msra.mxu0 %v2473_v38 }
0x1c7d   :  { %3145 = vmatprep.subr.bf16.mxu0 %v4120_v47 }
0x1d4e   :  { %v2454_v23 = vpop.f32.mrb[72].mxu0 }
0x1d4f   :  { %v2460_v26 = vmul.f32 %v2454_v23, %v2406_v53  ;;  %v3131_v27 = vpop.f32.mrb[73].mxu0 }
0x1d50   :  { %v2457_v57 = vpop.f32.mrb[74].mxu0 }
0x1d51   :  { %v2462_v51 = vpack.c.bf16 %v2460_v26, %v2460_v26  ;;  %v3132_v45 = vpop.f32.mrb[75].mxu0 }
0x1d53   :  { %3136 = vmatmul.mubr.msk.bf16.vlgmr.msra.gmra.mrb[76].mxu0 %vm78_vm1, %v2462_v51 }
0x1d54   :  { %3147 = vmatprep.mubr.msk.bf16.mxu0 %vm3391_vm6, %v4120_v47  ;;  %3146 = vmatpush3.bf16.msra.mxu0 %v2576_v34 }
0x1e26   :  { %v2509_v31 = vpop.f32.mrb[76].mxu0 }
0x1e27   :  { %v2510_v21 = vadd.f32 %v2751_v29, %v2509_v31  ;;  %v3137_v43 = vpop.f32.mrb[77].mxu0 }
0x1e28   :  { %v2512_v63 = vpop.f32.mrb[78].mxu0 }
0x1e29   :  { %v2515_v20 = vadd.f32 %v2510_v21, %v4001_v50  ;;  %v3138_v35 = vpop.f32.mrb[79].mxu0 }
0x1e2b   :  { %v2517_v0 = vpack.c.bf16 %v2515_v20, %v2515_v20 }
0x1e2d   :  { %3142 = vmatmul.mubr.msk.bf16.vlgmr.msra.gmra.mrb[52].mxu1 %vm78_vm1, %v2517_v0 }
0x1e2e   :  { %3152 = vmatpush3.bf16.msra.mxu1 %v3808_v46  ;;  %3153 = vmatprep.mubr.msk.bf16.mxu1 %vm3391_vm6, %v4120_v47  ;;  %v2755_v46 = vld [vmem:[#allocation2 + $0x110] ss:$0 sm:$0xff] }
0x1f00   :  { %v2564_v7 = vpop.f32.mrb[52].mxu1 }
0x1f01   :  { %v2565_v58 = vadd.f32 %v2753_v32, %v2564_v7  ;;  %v3143_v59 = vpop.f32.mrb[53].mxu1 }
0x1f02   :  { %v2567_v2 = vpop.f32.mrb[54].mxu1 }
0x1f03   :  { %vm2570_vm0 = vcmp.ge.f32.partialorder %v2565_v58, 0.0  ;;  %v2571_v50 = vmul.f32 0.01, %v2565_v58  ;;  %v3144_v28 = vpop.f32.mrb[55].mxu1 }
0x1f05   :  { %v2572_v11 = vsel %vm2570_vm0, %v2565_v58, %v2571_v50 }
0x1f06   :  { %v2575_v39 = vpack.c.bf16 %v2572_v11, %v2572_v11 }
0x1f08   :  { %3148 = vmatmul.mubr.msk.bf16.vlgmr.msra.gmra.mrb[80].mxu0 %vm689_vm10, %v2575_v39 }
0x1fdb   :  { %v2619_v36 = vpop.f32.mrb[80].mxu0 }
0x1fdc   :  { %v2620_v12 = vadd.f32 %v2755_v46, %v2619_v36  ;;  %v3149_v47 = vpop.f32.mrb[81].mxu0 }
0x1fdd   :  { %v2622_v37 = vpop.f32.mrb[82].mxu0 }
0x1fde   :  { %v2625_v33 = vadd.f32 %v2620_v12, %v2515_v20  ;;  %v3150_v40 = vpop.f32.mrb[83].mxu0 }
0x1fe0   :  { %v2626_v30 = vpack.c.bf16 %v2625_v33, %v2625_v33 }
0x1fe2   :  { %3154 = vmatmul.mubr.msk.bf16.vlgmr.msra.gmra.mrb[56].mxu1 %vm78_vm1, %v2626_v30 }
0x20b5   :  { %v2664_v14 = vpop.f32.mrb[56].mxu1 }
0x20b6   :  { %v2665_v41 = vadd.f32 %v3815_v6, %v2664_v14  ;;  %v3155_v52 = vpop.f32.mrb[57].mxu1 }
0x20b7   :  { %v2667_v48 = vpop.f32.mrb[58].mxu1 }
0x20b8   :  { %v2670_v54 = vmul.f32 0.5, %v2665_v41  ;;  %v3156_v55 = vpop.f32.mrb[59].mxu1 }
0x20ba   :  { %3343 = vtanh.f32 %v2670_v54 }
0x20c4   :  { %v3344_v44 = vpop.eup %3343 }
0x20c5   :  { %v2672_v19 = vadd.f32 1.0, %v3344_v44 }
0x20c7   :  { %v2673_v3 = vmul.f32 0.5, %v2672_v19 }
0x20c9   :  { %v2675_v22 = vrot.slane %v2673_v3, 6 }
0x20cb   :  { %v2677_v16 = vsel %vm480_vm4, %v3818_v24, %v2675_v22 }
0x20cc   :  { %2679 = vst.msk [vmem:[%s4102_s2] sm:$0xf] %vm2678_vm3, %v2677_v16 }
0x20cd   :  { %2684 = vsyncpa [#allocation3], 1 }

</bundles_post_ra>
